<compile_context>
chip_gen: v5e
topology: v5e:2x2
jax: 0.10.0
libtpu: 0.0.40
codegen_flags: <defaults>
</compile_context>

<pallas_src>
import math
from functools import partial

import jax
import jax.numpy as jnp
from jax.experimental import pallas as pl
from jax.experimental.pallas import tpu as pltpu


# ----------------------------- in-kernel helpers -----------------------------

def _layernorm(x, g, b, eps=1e-6):
    # Matches BERT-pytorch LayerNorm: torch.std is unbiased (ddof=1),
    # eps is added to std (not to var).  One-pass form: the two reductions
    # (sum, sum of squares) are independent -> shorter critical path.
    d = x.shape[-1]
    s1 = jnp.sum(x, axis=-1, keepdims=True)
    s2 = jnp.sum(x * x, axis=-1, keepdims=True)
    mean = s1 * (1.0 / d)
    var = jnp.maximum((s2 - s1 * mean) / (d - 1), 0.0)   # clamp cancellation noise
    inv = pl.reciprocal(jnp.sqrt(var) + eps, approx=False)
    return g * (x - mean) * inv + b


def _gelu_tanh(x):
    # BERT-pytorch GELU (tanh approximation)
    return 0.5 * x * (1.0 + jnp.tanh(math.sqrt(2.0 / math.pi)
                                     * (x + 0.044715 * x * x * x)))


# ------------------------------ fused model kernel -----------------------------

def transformer_pad_kernel(n_head, n_layer,
                           x_ref, pe_ref, bias_ref, vmask_ref,
                           ln1_g_ref, ln1_b_ref,
                           wqkv_ref, bqkv_ref, wo_ref, bo_ref,
                           ln2_g_ref, ln2_b_ref,
                           w1_ref, b1_ref, w2_ref, b2_ref,
                           o_ref):
    BSp, D = x_ref.shape                   # BSp = padded batch*seq, folded into sublanes
    H = n_head

    y = x_ref[...] + pe_ref[...]           # fused positional-embedding add
    bias = bias_ref[...]                   # (BSp, H*BSp) padding + block-diag + pad-row bias
    vmask = vmask_ref[...]                 # (H*BSp, D) 0/1 block-diagonal head selector

    for l in range(n_layer):               # static loop: all layers in one launch
        # ---- attention sublayer: y + attn(LN(y)) ----
        xn = _layernorm(y, ln1_g_ref[l], ln1_b_ref[l])
        # fused QKV; 1/sqrt(dk) already folded into the Q columns at init time
        qkv = (jnp.dot(xn, wqkv_ref[l], preferred_element_type=jnp.float32)
               + bqkv_ref[l])              # (BSp, 3D)
        q = qkv[:, :D]
        k = qkv[:, D:2 * D]
        v = qkv[:, 2 * D:3 * D]

        # Block-arranged K / V: replicate down sublanes, mask to block-diagonal.
        # v_aug appends the selector itself so the context matmul also produces
        # the per-head softmax denominators, already broadcast across dk lanes.
        k_blk = jnp.concatenate([k] * H, axis=0) * vmask          # (H*BSp, D)
        v_blk = jnp.concatenate([v] * H, axis=0) * vmask          # (H*BSp, D)
        v_aug = jnp.concatenate([v_blk, vmask], axis=1)           # (H*BSp, 2D)

        # all-head scores in one matmul; bias kills padded keys, cross-batch
        # entries and the sublane-padding rows
        s = (jnp.einsum('qd,kd->qk', q, k_blk,
                        preferred_element_type=jnp.float32) + bias)   # (BSp, H*BSp)
        # global row max is exact per head block (shared shift cancels in the
        # per-block normalization); masked entries underflow to exactly 0
        p = jnp.exp(s - jnp.max(s, axis=-1, keepdims=True))

        ctx_aug = jnp.dot(p, v_aug, preferred_element_type=jnp.float32)  # (BSp, 2D)
        ctx = ctx_aug[:, :D] * pl.reciprocal(ctx_aug[:, D:2 * D], approx=True)

        y = (y + jnp.dot(ctx, wo_ref[l], preferred_element_type=jnp.float32)
             + bo_ref[l])                   # SublayerConnection (dropout = identity)

        # ---- feed-forward sublayer: y + FFN(LN(y)) ----
        xn2 = _layernorm(y, ln2_g_ref[l], ln2_b_ref[l])
        hid = _gelu_tanh(jnp.dot(xn2, w1_ref[l],
                                 preferred_element_type=jnp.float32) + b1_ref[l])
        y = y + jnp.dot(hid, w2_ref[l], preferred_element_type=jnp.float32) + b2_ref[l]

    o_ref[...] = y.astype(o_ref.dtype)


# ------------------------------- wrapper / call --------------------------------

def positional_embedding(seq_len, d_model):
    position = jnp.arange(seq_len, dtype=jnp.float32)[:, None]
    div_term = jnp.exp(jnp.arange(0, d_model, 2, dtype=jnp.float32)
                       * -(math.log(10000.0) / d_model))
    pe = jnp.zeros((seq_len, d_model), jnp.float32)
    pe = pe.at[:, 0::2].set(jnp.sin(position * div_term))
    pe = pe.at[:, 1::2].set(jnp.cos(position * div_term))
    return pe  # (seq_len, d_model)


def _cost_estimate(BSp, D, d_ff, n_head, n_layer):
    HB = n_head * BSp
    per_layer_flops = (2 * BSp * D * 3 * D          # fused QKV
                       + 2 * BSp * D * HB           # block scores
                       + 2 * BSp * HB * 2 * D       # block context + denominators
                       + 2 * BSp * D * D            # out projection
                       + 2 * 2 * BSp * D * d_ff)    # FFN
    transcendentals = n_layer * (BSp * HB + BSp * d_ff + 5 * BSp)  # exp, tanh, recip/rsqrt
    weight_elems = n_layer * (4 * D + D * 3 * D + 3 * D + D * D + D
                              + D * d_ff + d_ff + d_ff * D + D)
    act_elems = 3 * BSp * D + BSp * HB + HB * D
    return pl.CostEstimate(flops=n_layer * per_layer_flops,
                           transcendentals=transcendentals,
                           bytes_accessed=4 * (weight_elems + act_elems))


def transformer_pad_forward(x, mask, layer_params, n_head):
    B, S, D = x.shape
    L = len(layer_params)
    d_ff = layer_params[0]["w1"].shape[1]
    dk = D // n_head
    BS = B * S
    BSp = ((BS + 7) // 8) * 8          # pad folded rows to a sublane multiple
    pad = BSp - BS

    # degenerate-softmax guard (a fully masked batch would also break the reference)
    if not isinstance(mask, jax.core.Tracer):
        if bool(jnp.any(jnp.sum(mask, axis=-1) == 0)):
            raise ValueError("transformer_pad: a batch has all tokens masked")

    # all_embedding = x + self.position(5)   (module hardcodes length 5 == S)
    pe = positional_embedding(S, D)
    pe_flat = jnp.tile(pe, (B, 1))                    # (BS, D)
    x_flat = x.reshape(BS, D)
    if pad:
        x_flat = jnp.pad(x_flat, ((0, pad), (0, 0)))
        pe_flat = jnp.pad(pe_flat, ((0, pad), (0, 0)))

    # Additive attention bias replacing masked_fill:
    #   padded key columns -> -1e9 (reference semantics),
    #   cross-batch entries and sublane-pad rows -> -2e9.
    # After max-subtraction exp() of both is exactly 0, so the folded batches
    # (and the dummy pad rows) stay independent, identical to the per-batch ref.
    key_bias = (mask.astype(jnp.float32) - 1.0).reshape(BS) * 1e9   # 0 keep, -1e9 pad
    key_bias = jnp.pad(key_bias, (0, pad))
    batch_id = jnp.pad(jnp.repeat(jnp.arange(B), S), (0, pad), constant_values=-1)
    same_batch = batch_id[:, None] == batch_id[None, :]
    bias_blk = jnp.where(same_batch, key_bias[None, :], -2e9).astype(jnp.float32)
    bias_t = jnp.tile(bias_blk, (1, n_head))          # (BSp, H*BSp), same bias per head

    # 0/1 block-diagonal head selector: rows of head h pick the dk lanes of head h
    row_head = jnp.repeat(jnp.arange(n_head), BSp)    # (H*BSp,)
    col_head = jnp.repeat(jnp.arange(n_head), dk)     # (D,)
    vmask = (row_head[:, None] == col_head[None, :]).astype(jnp.float32)  # (H*BSp, D)

    def stk(name):
        return jnp.stack([p[name] for p in layer_params], axis=0)

    args = [x_flat, pe_flat, bias_t, vmask,
            stk("ln1_g"), stk("ln1_b"),
            stk("wqkv"), stk("bqkv"), stk("wo"), stk("bo"),
            stk("ln2_g"), stk("ln2_b"),
            stk("w1"), stk("b1"), stk("w2"), stk("b2")]

    out_flat = pl.pallas_call(
        partial(transformer_pad_kernel, n_head, L),
        out_shape=jax.ShapeDtypeStruct((BSp, D), jnp.float32),
        cost_estimate=_cost_estimate(BSp, D, d_ff, n_head, L),
        # no grid: single invocation, every (tiny) operand resident in VMEM.
        # Keep the scoped-VMEM request small (~150 KB footprint) so surrounding
        # XLA fusions keep headroom, esp. on v7x's 64 MiB VMEM.
        compiler_params=pltpu.CompilerParams(vmem_limit_bytes=4 * 1024 * 1024),
    )(*args)
    return out_flat[:BS].reshape(B, S, D)


def init_layer_params(key, d_model, d_ff, n_head):
    ks = jax.random.split(key, 6)

    def lin(k, din, dout):
        # (in, out) layout so kernel does x @ W + b  (== torch x @ W_t.T + b)
        w = jax.random.normal(k, (din, dout), jnp.float32) * 0.02
        b = jnp.zeros((1, dout), jnp.float32)
        return w, b

    wq, bq = lin(ks[0], d_model, d_model)
    wk, bk = lin(ks[1], d_model, d_model)
    wv, bv = lin(ks[2], d_model, d_model)
    wo, bo = lin(ks[3], d_model, d_model)
    w1, b1 = lin(ks[4], d_model, d_ff)
    w2, b2 = lin(ks[5], d_ff, d_model)
    scale = 1.0 / math.sqrt(d_model // n_head)        # fold 1/sqrt(dk) into Q at init
    ones = jnp.ones((1, d_model), jnp.float32)
    zeros = jnp.zeros((1, d_model), jnp.float32)
    return dict(ln1_g=ones, ln1_b=zeros, ln2_g=ones, ln2_b=zeros,
                wqkv=jnp.concatenate([wq * scale, wk, wv], axis=1),   # fused (D, 3D)
                bqkv=jnp.concatenate([bq * scale, bk, bv], axis=1),   # fused (1, 3D)
                wo=wo, bo=bo, w1=w1, b1=b1, w2=w2, b2=b2)


# ----------------------------------- main --------------------------------------

if __name__ == "__main__":
    # args.latent_dims[0]=32, args.n_head=4, args.n_layer=2; seq len fixed to 5
    # by self.position(5); attn_dropout irrelevant in eval mode.
    B, S, D, H, N_LAYER = 2, 5, 32, 4, 2
    D_FF = D * 4

    key = jax.random.PRNGKey(0)
    kx, kp = jax.random.split(key)
    x = jax.random.normal(kx, (B, S, D), jnp.float32)
    # padding mask: batch 0 has no padding, batch 1 pads the last two tokens
    mask = jnp.array([[1, 1, 1, 1, 1],
                      [1, 1, 1, 0, 0]], dtype=jnp.float32)

    layer_keys = jax.random.split(kp, N_LAYER)
    layer_params = [init_layer_params(k, D, D_FF, H) for k in layer_keys]

    out = transformer_pad_forward(x, mask, layer_params, H)
    out = jax.block_until_ready(out)
    assert out.shape == (B, S, D) and out.dtype == jnp.float32
    assert bool(jnp.all(jnp.isfinite(out)))
    print("KERNEL_OK")
</pallas_src>

<mosaic_0001>
module attributes {stable_mosaic.version = 11 : i64} {
  func.func @transformer_pad_kernel(%arg0: memref<16x32xf32, #tpu.memory_space<vmem>>, %arg1: memref<16x32xf32, #tpu.memory_space<vmem>>, %arg2: memref<16x64xf32, #tpu.memory_space<vmem>>, %arg3: memref<64x32xf32, #tpu.memory_space<vmem>>, %arg4: memref<2x1x32xf32, #tpu.memory_space<vmem>>, %arg5: memref<2x1x32xf32, #tpu.memory_space<vmem>>, %arg6: memref<2x32x96xf32, #tpu.memory_space<vmem>>, %arg7: memref<2x1x96xf32, #tpu.memory_space<vmem>>, %arg8: memref<2x32x32xf32, #tpu.memory_space<vmem>>, %arg9: memref<2x1x32xf32, #tpu.memory_space<vmem>>, %arg10: memref<2x1x32xf32, #tpu.memory_space<vmem>>, %arg11: memref<2x1x32xf32, #tpu.memory_space<vmem>>, %arg12: memref<2x32x128xf32, #tpu.memory_space<vmem>>, %arg13: memref<2x1x128xf32, #tpu.memory_space<vmem>>, %arg14: memref<2x128x32xf32, #tpu.memory_space<vmem>>, %arg15: memref<2x1x32xf32, #tpu.memory_space<vmem>>, %arg16: memref<16x32xf32, #tpu.memory_space<vmem>>) attributes {dimension_semantics = [], scalar_prefetch = 0 : i64, scratch_operands = 0 : i64, tpu.core_type = #tpu.core_type<tc>} {
    %c0 = arith.constant 0 : index
    %c0_0 = arith.constant 0 : index
    %0 = vector.load %arg0[%c0, %c0_0] : memref<16x32xf32, #tpu.memory_space<vmem>>, vector<16x32xf32>
    %c0_1 = arith.constant 0 : index
    %c0_2 = arith.constant 0 : index
    %1 = vector.load %arg1[%c0_1, %c0_2] : memref<16x32xf32, #tpu.memory_space<vmem>>, vector<16x32xf32>
    %2 = arith.addf %0, %1 : vector<16x32xf32>
    %c0_3 = arith.constant 0 : index
    %c0_4 = arith.constant 0 : index
    %3 = vector.load %arg2[%c0_3, %c0_4] : memref<16x64xf32, #tpu.memory_space<vmem>>, vector<16x64xf32>
    %c0_5 = arith.constant 0 : index
    %c0_6 = arith.constant 0 : index
    %4 = vector.load %arg3[%c0_5, %c0_6] : memref<64x32xf32, #tpu.memory_space<vmem>>, vector<64x32xf32>
    %c0_7 = arith.constant 0 : index
    %c0_8 = arith.constant 0 : index
    %c0_9 = arith.constant 0 : index
    %5 = vector.load %arg4[%c0_7, %c0_8, %c0_9] : memref<2x1x32xf32, #tpu.memory_space<vmem>>, vector<1x1x32xf32>
    %6 = vector.shape_cast %5 : vector<1x1x32xf32> to vector<1x32xf32>
    %c0_10 = arith.constant 0 : index
    %c0_11 = arith.constant 0 : index
    %c0_12 = arith.constant 0 : index
    %7 = vector.load %arg5[%c0_10, %c0_11, %c0_12] : memref<2x1x32xf32, #tpu.memory_space<vmem>>, vector<1x1x32xf32>
    %8 = vector.shape_cast %7 : vector<1x1x32xf32> to vector<1x32xf32>
    %cst = arith.constant dense<0.000000e+00> : vector<16xf32>
    %9 = vector.multi_reduction <add>, %2, %cst [1] : vector<16x32xf32> to vector<16xf32>
    %10 = vector.shape_cast %9 : vector<16xf32> to vector<16x1xf32>
    %11 = arith.mulf %2, %2 : vector<16x32xf32>
    %cst_13 = arith.constant dense<0.000000e+00> : vector<16xf32>
    %12 = vector.multi_reduction <add>, %11, %cst_13 [1] : vector<16x32xf32> to vector<16xf32>
    %13 = vector.shape_cast %12 : vector<16xf32> to vector<16x1xf32>
    %cst_14 = arith.constant 3.125000e-02 : f32
    %14 = vector.broadcast %cst_14 : f32 to vector<16x1xf32>
    %15 = arith.mulf %10, %14 : vector<16x1xf32>
    %16 = arith.mulf %10, %15 : vector<16x1xf32>
    %17 = arith.subf %13, %16 : vector<16x1xf32>
    %cst_15 = arith.constant 3.100000e+01 : f32
    %18 = vector.broadcast %cst_15 : f32 to vector<16x1xf32>
    %19 = arith.divf %17, %18 : vector<16x1xf32>
    %cst_16 = arith.constant 0.000000e+00 : f32
    %20 = vector.broadcast %cst_16 : f32 to vector<16x1xf32>
    %21 = arith.maximumf %19, %20 : vector<16x1xf32>
    %22 = math.sqrt %21 : vector<16x1xf32>
    %cst_17 = arith.constant 9.99999997E-7 : f32
    %23 = vector.broadcast %cst_17 : f32 to vector<16x1xf32>
    %24 = arith.addf %22, %23 : vector<16x1xf32>
    %25 = tpu.reciprocal %24 : vector<16x1xf32> -> vector<16x1xf32>
    %26 = vector.broadcast %15 : vector<16x1xf32> to vector<16x32xf32>
    %27 = arith.subf %2, %26 : vector<16x32xf32>
    %28 = vector.broadcast %6 : vector<1x32xf32> to vector<16x32xf32>
    %29 = arith.mulf %28, %27 : vector<16x32xf32>
    %30 = vector.broadcast %25 : vector<16x1xf32> to vector<16x32xf32>
    %31 = arith.mulf %29, %30 : vector<16x32xf32>
    %32 = vector.broadcast %8 : vector<1x32xf32> to vector<16x32xf32>
    %33 = arith.addf %31, %32 : vector<16x32xf32>
    %c0_18 = arith.constant 0 : index
    %c0_19 = arith.constant 0 : index
    %c0_20 = arith.constant 0 : index
    %34 = vector.load %arg6[%c0_18, %c0_19, %c0_20] : memref<2x32x96xf32, #tpu.memory_space<vmem>>, vector<1x32x96xf32>
    %35 = vector.shape_cast %34 : vector<1x32x96xf32> to vector<32x96xf32>
    %cst_21 = arith.constant dense<0.000000e+00> : vector<16x96xf32>
    %36 = tpu.matmul %33, %35, %cst_21 {dimension_numbers = #tpu.dot_dimension_numbers<[1], [0], [0], [1], [0, 0, 1, 1], [], []>} : vector<16x32xf32>, vector<32x96xf32>, vector<16x96xf32> -> vector<16x96xf32>
    %c0_22 = arith.constant 0 : index
    %c0_23 = arith.constant 0 : index
    %c0_24 = arith.constant 0 : index
    %37 = vector.load %arg7[%c0_22, %c0_23, %c0_24] : memref<2x1x96xf32, #tpu.memory_space<vmem>>, vector<1x1x96xf32>
    %38 = vector.shape_cast %37 : vector<1x1x96xf32> to vector<1x96xf32>
    %39 = vector.broadcast %38 : vector<1x96xf32> to vector<16x96xf32>
    %40 = arith.addf %36, %39 : vector<16x96xf32>
    %41 = vector.extract_strided_slice %40 {offsets = [0, 0], sizes = [16, 32], strides = [1, 1]} : vector<16x96xf32> to vector<16x32xf32>
    %42 = vector.extract_strided_slice %40 {offsets = [0, 32], sizes = [16, 32], strides = [1, 1]} : vector<16x96xf32> to vector<16x32xf32>
    %43 = vector.extract_strided_slice %40 {offsets = [0, 64], sizes = [16, 32], strides = [1, 1]} : vector<16x96xf32> to vector<16x32xf32>
    %44 = tpu.concatenate %42, %42, %42, %42 in 0 : vector<16x32xf32>, vector<16x32xf32>, vector<16x32xf32>, vector<16x32xf32> -> vector<64x32xf32>
    %45 = arith.mulf %44, %4 : vector<64x32xf32>
    %46 = tpu.concatenate %43, %43, %43, %43 in 0 : vector<16x32xf32>, vector<16x32xf32>, vector<16x32xf32>, vector<16x32xf32> -> vector<64x32xf32>
    %47 = arith.mulf %46, %4 : vector<64x32xf32>
    %48 = tpu.concatenate %47, %4 in 1 : vector<64x32xf32>, vector<64x32xf32> -> vector<64x64xf32>
    "tpu.trace_start"() <{level = 10 : i32, message = "qd,kd->qk"}> : () -> ()
    %cst_25 = arith.constant dense<0.000000e+00> : vector<16x64xf32>
    %49 = tpu.matmul %41, %45, %cst_25 {dimension_numbers = #tpu.dot_dimension_numbers<[1], [1], [0], [0], [0, 0, 1, 0], [], []>} : vector<16x32xf32>, vector<64x32xf32>, vector<16x64xf32> -> vector<16x64xf32>
    "tpu.trace_stop"() : () -> ()
    %50 = arith.addf %49, %3 : vector<16x64xf32>
    %cst_26 = arith.constant dense<0xFF800000> : vector<16xf32>
    %51 = vector.multi_reduction <maximumf>, %50, %cst_26 [1] : vector<16x64xf32> to vector<16xf32>
    %52 = vector.shape_cast %51 : vector<16xf32> to vector<16x1xf32>
    %53 = vector.broadcast %52 : vector<16x1xf32> to vector<16x64xf32>
    %54 = arith.subf %50, %53 : vector<16x64xf32>
    %55 = math.exp %54 : vector<16x64xf32>
    %cst_27 = arith.constant dense<0.000000e+00> : vector<16x64xf32>
    %56 = tpu.matmul %55, %48, %cst_27 {dimension_numbers = #tpu.dot_dimension_numbers<[1], [0], [0], [1], [0, 0, 1, 1], [], []>} : vector<16x64xf32>, vector<64x64xf32>, vector<16x64xf32> -> vector<16x64xf32>
    %57 = vector.extract_strided_slice %56 {offsets = [0, 0], sizes = [16, 32], strides = [1, 1]} : vector<16x64xf32> to vector<16x32xf32>
    %58 = vector.extract_strided_slice %56 {offsets = [0, 32], sizes = [16, 32], strides = [1, 1]} : vector<16x64xf32> to vector<16x32xf32>
    %59 = tpu.reciprocal %58 {approx = true} : vector<16x32xf32> -> vector<16x32xf32>
    %60 = arith.mulf %57, %59 : vector<16x32xf32>
    %c0_28 = arith.constant 0 : index
    %c0_29 = arith.constant 0 : index
    %c0_30 = arith.constant 0 : index
    %61 = vector.load %arg8[%c0_28, %c0_29, %c0_30] : memref<2x32x32xf32, #tpu.memory_space<vmem>>, vector<1x32x32xf32>
    %62 = vector.shape_cast %61 : vector<1x32x32xf32> to vector<32x32xf32>
    %cst_31 = arith.constant dense<0.000000e+00> : vector<16x32xf32>
    %63 = tpu.matmul %60, %62, %cst_31 {dimension_numbers = #tpu.dot_dimension_numbers<[1], [0], [0], [1], [0, 0, 1, 1], [], []>} : vector<16x32xf32>, vector<32x32xf32>, vector<16x32xf32> -> vector<16x32xf32>
    %64 = arith.addf %2, %63 : vector<16x32xf32>
    %c0_32 = arith.constant 0 : index
    %c0_33 = arith.constant 0 : index
    %c0_34 = arith.constant 0 : index
    %65 = vector.load %arg9[%c0_32, %c0_33, %c0_34] : memref<2x1x32xf32, #tpu.memory_space<vmem>>, vector<1x1x32xf32>
    %66 = vector.shape_cast %65 : vector<1x1x32xf32> to vector<1x32xf32>
    %67 = vector.broadcast %66 : vector<1x32xf32> to vector<16x32xf32>
    %68 = arith.addf %64, %67 : vector<16x32xf32>
    %c0_35 = arith.constant 0 : index
    %c0_36 = arith.constant 0 : index
    %c0_37 = arith.constant 0 : index
    %69 = vector.load %arg10[%c0_35, %c0_36, %c0_37] : memref<2x1x32xf32, #tpu.memory_space<vmem>>, vector<1x1x32xf32>
    %70 = vector.shape_cast %69 : vector<1x1x32xf32> to vector<1x32xf32>
    %c0_38 = arith.constant 0 : index
    %c0_39 = arith.constant 0 : index
    %c0_40 = arith.constant 0 : index
    %71 = vector.load %arg11[%c0_38, %c0_39, %c0_40] : memref<2x1x32xf32, #tpu.memory_space<vmem>>, vector<1x1x32xf32>
    %72 = vector.shape_cast %71 : vector<1x1x32xf32> to vector<1x32xf32>
    %cst_41 = arith.constant dense<0.000000e+00> : vector<16xf32>
    %73 = vector.multi_reduction <add>, %68, %cst_41 [1] : vector<16x32xf32> to vector<16xf32>
    %74 = vector.shape_cast %73 : vector<16xf32> to vector<16x1xf32>
    %75 = arith.mulf %68, %68 : vector<16x32xf32>
    %cst_42 = arith.constant dense<0.000000e+00> : vector<16xf32>
    %76 = vector.multi_reduction <add>, %75, %cst_42 [1] : vector<16x32xf32> to vector<16xf32>
    %77 = vector.shape_cast %76 : vector<16xf32> to vector<16x1xf32>
    %cst_43 = arith.constant 3.125000e-02 : f32
    %78 = vector.broadcast %cst_43 : f32 to vector<16x1xf32>
    %79 = arith.mulf %74, %78 : vector<16x1xf32>
    %80 = arith.mulf %74, %79 : vector<16x1xf32>
    %81 = arith.subf %77, %80 : vector<16x1xf32>
    %cst_44 = arith.constant 3.100000e+01 : f32
    %82 = vector.broadcast %cst_44 : f32 to vector<16x1xf32>
    %83 = arith.divf %81, %82 : vector<16x1xf32>
    %cst_45 = arith.constant 0.000000e+00 : f32
    %84 = vector.broadcast %cst_45 : f32 to vector<16x1xf32>
    %85 = arith.maximumf %83, %84 : vector<16x1xf32>
    %86 = math.sqrt %85 : vector<16x1xf32>
    %cst_46 = arith.constant 9.99999997E-7 : f32
    %87 = vector.broadcast %cst_46 : f32 to vector<16x1xf32>
    %88 = arith.addf %86, %87 : vector<16x1xf32>
    %89 = tpu.reciprocal %88 : vector<16x1xf32> -> vector<16x1xf32>
    %90 = vector.broadcast %79 : vector<16x1xf32> to vector<16x32xf32>
    %91 = arith.subf %68, %90 : vector<16x32xf32>
    %92 = vector.broadcast %70 : vector<1x32xf32> to vector<16x32xf32>
    %93 = arith.mulf %92, %91 : vector<16x32xf32>
    %94 = vector.broadcast %89 : vector<16x1xf32> to vector<16x32xf32>
    %95 = arith.mulf %93, %94 : vector<16x32xf32>
    %96 = vector.broadcast %72 : vector<1x32xf32> to vector<16x32xf32>
    %97 = arith.addf %95, %96 : vector<16x32xf32>
    %c0_47 = arith.constant 0 : index
    %c0_48 = arith.constant 0 : index
    %c0_49 = arith.constant 0 : index
    %98 = vector.load %arg12[%c0_47, %c0_48, %c0_49] : memref<2x32x128xf32, #tpu.memory_space<vmem>>, vector<1x32x128xf32>
    %99 = vector.shape_cast %98 : vector<1x32x128xf32> to vector<32x128xf32>
    %cst_50 = arith.constant dense<0.000000e+00> : vector<16x128xf32>
    %100 = tpu.matmul %97, %99, %cst_50 {dimension_numbers = #tpu.dot_dimension_numbers<[1], [0], [0], [1], [0, 0, 1, 1], [], []>} : vector<16x32xf32>, vector<32x128xf32>, vector<16x128xf32> -> vector<16x128xf32>
    %c0_51 = arith.constant 0 : index
    %c0_52 = arith.constant 0 : index
    %c0_53 = arith.constant 0 : index
    %101 = vector.load %arg13[%c0_51, %c0_52, %c0_53] : memref<2x1x128xf32, #tpu.memory_space<vmem>>, vector<1x1x128xf32>
    %102 = vector.shape_cast %101 : vector<1x1x128xf32> to vector<1x128xf32>
    %103 = vector.broadcast %102 : vector<1x128xf32> to vector<16x128xf32>
    %104 = arith.addf %100, %103 : vector<16x128xf32>
    %cst_54 = arith.constant 5.000000e-01 : f32
    %105 = vector.broadcast %cst_54 : f32 to vector<16x128xf32>
    %106 = arith.mulf %105, %104 : vector<16x128xf32>
    %cst_55 = arith.constant 4.471500e-02 : f32
    %107 = vector.broadcast %cst_55 : f32 to vector<16x128xf32>
    %108 = arith.mulf %107, %104 : vector<16x128xf32>
    %109 = arith.mulf %108, %104 : vector<16x128xf32>
    %110 = arith.mulf %109, %104 : vector<16x128xf32>
    %111 = arith.addf %104, %110 : vector<16x128xf32>
    %cst_56 = arith.constant 0.797884583 : f32
    %112 = vector.broadcast %cst_56 : f32 to vector<16x128xf32>
    %113 = arith.mulf %112, %111 : vector<16x128xf32>
    %114 = math.tanh %113 : vector<16x128xf32>
    %cst_57 = arith.constant 1.000000e+00 : f32
    %115 = vector.broadcast %cst_57 : f32 to vector<16x128xf32>
    %116 = arith.addf %115, %114 : vector<16x128xf32>
    %117 = arith.mulf %106, %116 : vector<16x128xf32>
    %c0_58 = arith.constant 0 : index
    %c0_59 = arith.constant 0 : index
    %c0_60 = arith.constant 0 : index
    %118 = vector.load %arg14[%c0_58, %c0_59, %c0_60] : memref<2x128x32xf32, #tpu.memory_space<vmem>>, vector<1x128x32xf32>
    %119 = vector.shape_cast %118 : vector<1x128x32xf32> to vector<128x32xf32>
    %cst_61 = arith.constant dense<0.000000e+00> : vector<16x32xf32>
    %120 = tpu.matmul %117, %119, %cst_61 {dimension_numbers = #tpu.dot_dimension_numbers<[1], [0], [0], [1], [0, 0, 1, 1], [], []>} : vector<16x128xf32>, vector<128x32xf32>, vector<16x32xf32> -> vector<16x32xf32>
    %121 = arith.addf %68, %120 : vector<16x32xf32>
    %c0_62 = arith.constant 0 : index
    %c0_63 = arith.constant 0 : index
    %c0_64 = arith.constant 0 : index
    %122 = vector.load %arg15[%c0_62, %c0_63, %c0_64] : memref<2x1x32xf32, #tpu.memory_space<vmem>>, vector<1x1x32xf32>
    %123 = vector.shape_cast %122 : vector<1x1x32xf32> to vector<1x32xf32>
    %124 = vector.broadcast %123 : vector<1x32xf32> to vector<16x32xf32>
    %125 = arith.addf %121, %124 : vector<16x32xf32>
    %c1 = arith.constant 1 : index
    %c0_65 = arith.constant 0 : index
    %c0_66 = arith.constant 0 : index
    %126 = vector.load %arg4[%c1, %c0_65, %c0_66] : memref<2x1x32xf32, #tpu.memory_space<vmem>>, vector<1x1x32xf32>
    %127 = vector.shape_cast %126 : vector<1x1x32xf32> to vector<1x32xf32>
    %c1_67 = arith.constant 1 : index
    %c0_68 = arith.constant 0 : index
    %c0_69 = arith.constant 0 : index
    %128 = vector.load %arg5[%c1_67, %c0_68, %c0_69] : memref<2x1x32xf32, #tpu.memory_space<vmem>>, vector<1x1x32xf32>
    %129 = vector.shape_cast %128 : vector<1x1x32xf32> to vector<1x32xf32>
    %cst_70 = arith.constant dense<0.000000e+00> : vector<16xf32>
    %130 = vector.multi_reduction <add>, %125, %cst_70 [1] : vector<16x32xf32> to vector<16xf32>
    %131 = vector.shape_cast %130 : vector<16xf32> to vector<16x1xf32>
    %132 = arith.mulf %125, %125 : vector<16x32xf32>
    %cst_71 = arith.constant dense<0.000000e+00> : vector<16xf32>
    %133 = vector.multi_reduction <add>, %132, %cst_71 [1] : vector<16x32xf32> to vector<16xf32>
    %134 = vector.shape_cast %133 : vector<16xf32> to vector<16x1xf32>
    %cst_72 = arith.constant 3.125000e-02 : f32
    %135 = vector.broadcast %cst_72 : f32 to vector<16x1xf32>
    %136 = arith.mulf %131, %135 : vector<16x1xf32>
    %137 = arith.mulf %131, %136 : vector<16x1xf32>
    %138 = arith.subf %134, %137 : vector<16x1xf32>
    %cst_73 = arith.constant 3.100000e+01 : f32
    %139 = vector.broadcast %cst_73 : f32 to vector<16x1xf32>
    %140 = arith.divf %138, %139 : vector<16x1xf32>
    %cst_74 = arith.constant 0.000000e+00 : f32
    %141 = vector.broadcast %cst_74 : f32 to vector<16x1xf32>
    %142 = arith.maximumf %140, %141 : vector<16x1xf32>
    %143 = math.sqrt %142 : vector<16x1xf32>
    %cst_75 = arith.constant 9.99999997E-7 : f32
    %144 = vector.broadcast %cst_75 : f32 to vector<16x1xf32>
    %145 = arith.addf %143, %144 : vector<16x1xf32>
    %146 = tpu.reciprocal %145 : vector<16x1xf32> -> vector<16x1xf32>
    %147 = vector.broadcast %136 : vector<16x1xf32> to vector<16x32xf32>
    %148 = arith.subf %125, %147 : vector<16x32xf32>
    %149 = vector.broadcast %127 : vector<1x32xf32> to vector<16x32xf32>
    %150 = arith.mulf %149, %148 : vector<16x32xf32>
    %151 = vector.broadcast %146 : vector<16x1xf32> to vector<16x32xf32>
    %152 = arith.mulf %150, %151 : vector<16x32xf32>
    %153 = vector.broadcast %129 : vector<1x32xf32> to vector<16x32xf32>
    %154 = arith.addf %152, %153 : vector<16x32xf32>
    %c1_76 = arith.constant 1 : index
    %c0_77 = arith.constant 0 : index
    %c0_78 = arith.constant 0 : index
    %155 = vector.load %arg6[%c1_76, %c0_77, %c0_78] : memref<2x32x96xf32, #tpu.memory_space<vmem>>, vector<1x32x96xf32>
    %156 = vector.shape_cast %155 : vector<1x32x96xf32> to vector<32x96xf32>
    %cst_79 = arith.constant dense<0.000000e+00> : vector<16x96xf32>
    %157 = tpu.matmul %154, %156, %cst_79 {dimension_numbers = #tpu.dot_dimension_numbers<[1], [0], [0], [1], [0, 0, 1, 1], [], []>} : vector<16x32xf32>, vector<32x96xf32>, vector<16x96xf32> -> vector<16x96xf32>
    %c1_80 = arith.constant 1 : index
    %c0_81 = arith.constant 0 : index
    %c0_82 = arith.constant 0 : index
    %158 = vector.load %arg7[%c1_80, %c0_81, %c0_82] : memref<2x1x96xf32, #tpu.memory_space<vmem>>, vector<1x1x96xf32>
    %159 = vector.shape_cast %158 : vector<1x1x96xf32> to vector<1x96xf32>
    %160 = vector.broadcast %159 : vector<1x96xf32> to vector<16x96xf32>
    %161 = arith.addf %157, %160 : vector<16x96xf32>
    %162 = vector.extract_strided_slice %161 {offsets = [0, 0], sizes = [16, 32], strides = [1, 1]} : vector<16x96xf32> to vector<16x32xf32>
    %163 = vector.extract_strided_slice %161 {offsets = [0, 32], sizes = [16, 32], strides = [1, 1]} : vector<16x96xf32> to vector<16x32xf32>
    %164 = vector.extract_strided_slice %161 {offsets = [0, 64], sizes = [16, 32], strides = [1, 1]} : vector<16x96xf32> to vector<16x32xf32>
    %165 = tpu.concatenate %163, %163, %163, %163 in 0 : vector<16x32xf32>, vector<16x32xf32>, vector<16x32xf32>, vector<16x32xf32> -> vector<64x32xf32>
    %166 = arith.mulf %165, %4 : vector<64x32xf32>
    %167 = tpu.concatenate %164, %164, %164, %164 in 0 : vector<16x32xf32>, vector<16x32xf32>, vector<16x32xf32>, vector<16x32xf32> -> vector<64x32xf32>
    %168 = arith.mulf %167, %4 : vector<64x32xf32>
    %169 = tpu.concatenate %168, %4 in 1 : vector<64x32xf32>, vector<64x32xf32> -> vector<64x64xf32>
    "tpu.trace_start"() <{level = 10 : i32, message = "qd,kd->qk"}> : () -> ()
    %cst_83 = arith.constant dense<0.000000e+00> : vector<16x64xf32>
    %170 = tpu.matmul %162, %166, %cst_83 {dimension_numbers = #tpu.dot_dimension_numbers<[1], [1], [0], [0], [0, 0, 1, 0], [], []>} : vector<16x32xf32>, vector<64x32xf32>, vector<16x64xf32> -> vector<16x64xf32>
    "tpu.trace_stop"() : () -> ()
    %171 = arith.addf %170, %3 : vector<16x64xf32>
    %cst_84 = arith.constant dense<0xFF800000> : vector<16xf32>
    %172 = vector.multi_reduction <maximumf>, %171, %cst_84 [1] : vector<16x64xf32> to vector<16xf32>
    %173 = vector.shape_cast %172 : vector<16xf32> to vector<16x1xf32>
    %174 = vector.broadcast %173 : vector<16x1xf32> to vector<16x64xf32>
    %175 = arith.subf %171, %174 : vector<16x64xf32>
    %176 = math.exp %175 : vector<16x64xf32>
    %cst_85 = arith.constant dense<0.000000e+00> : vector<16x64xf32>
    %177 = tpu.matmul %176, %169, %cst_85 {dimension_numbers = #tpu.dot_dimension_numbers<[1], [0], [0], [1], [0, 0, 1, 1], [], []>} : vector<16x64xf32>, vector<64x64xf32>, vector<16x64xf32> -> vector<16x64xf32>
    %178 = vector.extract_strided_slice %177 {offsets = [0, 0], sizes = [16, 32], strides = [1, 1]} : vector<16x64xf32> to vector<16x32xf32>
    %179 = vector.extract_strided_slice %177 {offsets = [0, 32], sizes = [16, 32], strides = [1, 1]} : vector<16x64xf32> to vector<16x32xf32>
    %180 = tpu.reciprocal %179 {approx = true} : vector<16x32xf32> -> vector<16x32xf32>
    %181 = arith.mulf %178, %180 : vector<16x32xf32>
    %c1_86 = arith.constant 1 : index
    %c0_87 = arith.constant 0 : index
    %c0_88 = arith.constant 0 : index
    %182 = vector.load %arg8[%c1_86, %c0_87, %c0_88] : memref<2x32x32xf32, #tpu.memory_space<vmem>>, vector<1x32x32xf32>
    %183 = vector.shape_cast %182 : vector<1x32x32xf32> to vector<32x32xf32>
    %cst_89 = arith.constant dense<0.000000e+00> : vector<16x32xf32>
    %184 = tpu.matmul %181, %183, %cst_89 {dimension_numbers = #tpu.dot_dimension_numbers<[1], [0], [0], [1], [0, 0, 1, 1], [], []>} : vector<16x32xf32>, vector<32x32xf32>, vector<16x32xf32> -> vector<16x32xf32>
    %185 = arith.addf %125, %184 : vector<16x32xf32>
    %c1_90 = arith.constant 1 : index
    %c0_91 = arith.constant 0 : index
    %c0_92 = arith.constant 0 : index
    %186 = vector.load %arg9[%c1_90, %c0_91, %c0_92] : memref<2x1x32xf32, #tpu.memory_space<vmem>>, vector<1x1x32xf32>
    %187 = vector.shape_cast %186 : vector<1x1x32xf32> to vector<1x32xf32>
    %188 = vector.broadcast %187 : vector<1x32xf32> to vector<16x32xf32>
    %189 = arith.addf %185, %188 : vector<16x32xf32>
    %c1_93 = arith.constant 1 : index
    %c0_94 = arith.constant 0 : index
    %c0_95 = arith.constant 0 : index
    %190 = vector.load %arg10[%c1_93, %c0_94, %c0_95] : memref<2x1x32xf32, #tpu.memory_space<vmem>>, vector<1x1x32xf32>
    %191 = vector.shape_cast %190 : vector<1x1x32xf32> to vector<1x32xf32>
    %c1_96 = arith.constant 1 : index
    %c0_97 = arith.constant 0 : index
    %c0_98 = arith.constant 0 : index
    %192 = vector.load %arg11[%c1_96, %c0_97, %c0_98] : memref<2x1x32xf32, #tpu.memory_space<vmem>>, vector<1x1x32xf32>
    %193 = vector.shape_cast %192 : vector<1x1x32xf32> to vector<1x32xf32>
    %cst_99 = arith.constant dense<0.000000e+00> : vector<16xf32>
    %194 = vector.multi_reduction <add>, %189, %cst_99 [1] : vector<16x32xf32> to vector<16xf32>
    %195 = vector.shape_cast %194 : vector<16xf32> to vector<16x1xf32>
    %196 = arith.mulf %189, %189 : vector<16x32xf32>
    %cst_100 = arith.constant dense<0.000000e+00> : vector<16xf32>
    %197 = vector.multi_reduction <add>, %196, %cst_100 [1] : vector<16x32xf32> to vector<16xf32>
    %198 = vector.shape_cast %197 : vector<16xf32> to vector<16x1xf32>
    %cst_101 = arith.constant 3.125000e-02 : f32
    %199 = vector.broadcast %cst_101 : f32 to vector<16x1xf32>
    %200 = arith.mulf %195, %199 : vector<16x1xf32>
    %201 = arith.mulf %195, %200 : vector<16x1xf32>
    %202 = arith.subf %198, %201 : vector<16x1xf32>
    %cst_102 = arith.constant 3.100000e+01 : f32
    %203 = vector.broadcast %cst_102 : f32 to vector<16x1xf32>
    %204 = arith.divf %202, %203 : vector<16x1xf32>
    %cst_103 = arith.constant 0.000000e+00 : f32
    %205 = vector.broadcast %cst_103 : f32 to vector<16x1xf32>
    %206 = arith.maximumf %204, %205 : vector<16x1xf32>
    %207 = math.sqrt %206 : vector<16x1xf32>
    %cst_104 = arith.constant 9.99999997E-7 : f32
    %208 = vector.broadcast %cst_104 : f32 to vector<16x1xf32>
    %209 = arith.addf %207, %208 : vector<16x1xf32>
    %210 = tpu.reciprocal %209 : vector<16x1xf32> -> vector<16x1xf32>
    %211 = vector.broadcast %200 : vector<16x1xf32> to vector<16x32xf32>
    %212 = arith.subf %189, %211 : vector<16x32xf32>
    %213 = vector.broadcast %191 : vector<1x32xf32> to vector<16x32xf32>
    %214 = arith.mulf %213, %212 : vector<16x32xf32>
    %215 = vector.broadcast %210 : vector<16x1xf32> to vector<16x32xf32>
    %216 = arith.mulf %214, %215 : vector<16x32xf32>
    %217 = vector.broadcast %193 : vector<1x32xf32> to vector<16x32xf32>
    %218 = arith.addf %216, %217 : vector<16x32xf32>
    %c1_105 = arith.constant 1 : index
    %c0_106 = arith.constant 0 : index
    %c0_107 = arith.constant 0 : index
    %219 = vector.load %arg12[%c1_105, %c0_106, %c0_107] : memref<2x32x128xf32, #tpu.memory_space<vmem>>, vector<1x32x128xf32>
    %220 = vector.shape_cast %219 : vector<1x32x128xf32> to vector<32x128xf32>
    %cst_108 = arith.constant dense<0.000000e+00> : vector<16x128xf32>
    %221 = tpu.matmul %218, %220, %cst_108 {dimension_numbers = #tpu.dot_dimension_numbers<[1], [0], [0], [1], [0, 0, 1, 1], [], []>} : vector<16x32xf32>, vector<32x128xf32>, vector<16x128xf32> -> vector<16x128xf32>
    %c1_109 = arith.constant 1 : index
    %c0_110 = arith.constant 0 : index
    %c0_111 = arith.constant 0 : index
    %222 = vector.load %arg13[%c1_109, %c0_110, %c0_111] : memref<2x1x128xf32, #tpu.memory_space<vmem>>, vector<1x1x128xf32>
    %223 = vector.shape_cast %222 : vector<1x1x128xf32> to vector<1x128xf32>
    %224 = vector.broadcast %223 : vector<1x128xf32> to vector<16x128xf32>
    %225 = arith.addf %221, %224 : vector<16x128xf32>
    %cst_112 = arith.constant 5.000000e-01 : f32
    %226 = vector.broadcast %cst_112 : f32 to vector<16x128xf32>
    %227 = arith.mulf %226, %225 : vector<16x128xf32>
    %cst_113 = arith.constant 4.471500e-02 : f32
    %228 = vector.broadcast %cst_113 : f32 to vector<16x128xf32>
    %229 = arith.mulf %228, %225 : vector<16x128xf32>
    %230 = arith.mulf %229, %225 : vector<16x128xf32>
    %231 = arith.mulf %230, %225 : vector<16x128xf32>
    %232 = arith.addf %225, %231 : vector<16x128xf32>
    %cst_114 = arith.constant 0.797884583 : f32
    %233 = vector.broadcast %cst_114 : f32 to vector<16x128xf32>
    %234 = arith.mulf %233, %232 : vector<16x128xf32>
    %235 = math.tanh %234 : vector<16x128xf32>
    %cst_115 = arith.constant 1.000000e+00 : f32
    %236 = vector.broadcast %cst_115 : f32 to vector<16x128xf32>
    %237 = arith.addf %236, %235 : vector<16x128xf32>
    %238 = arith.mulf %227, %237 : vector<16x128xf32>
    %c1_116 = arith.constant 1 : index
    %c0_117 = arith.constant 0 : index
    %c0_118 = arith.constant 0 : index
    %239 = vector.load %arg14[%c1_116, %c0_117, %c0_118] : memref<2x128x32xf32, #tpu.memory_space<vmem>>, vector<1x128x32xf32>
    %240 = vector.shape_cast %239 : vector<1x128x32xf32> to vector<128x32xf32>
    %cst_119 = arith.constant dense<0.000000e+00> : vector<16x32xf32>
    %241 = tpu.matmul %238, %240, %cst_119 {dimension_numbers = #tpu.dot_dimension_numbers<[1], [0], [0], [1], [0, 0, 1, 1], [], []>} : vector<16x128xf32>, vector<128x32xf32>, vector<16x32xf32> -> vector<16x32xf32>
    %242 = arith.addf %189, %241 : vector<16x32xf32>
    %c1_120 = arith.constant 1 : index
    %c0_121 = arith.constant 0 : index
    %c0_122 = arith.constant 0 : index
    %243 = vector.load %arg15[%c1_120, %c0_121, %c0_122] : memref<2x1x32xf32, #tpu.memory_space<vmem>>, vector<1x1x32xf32>
    %244 = vector.shape_cast %243 : vector<1x1x32xf32> to vector<1x32xf32>
    %245 = vector.broadcast %244 : vector<1x32xf32> to vector<16x32xf32>
    %246 = arith.addf %242, %245 : vector<16x32xf32>
    %c0_123 = arith.constant 0 : index
    %c0_124 = arith.constant 0 : index
    %247 = vector.load %arg16[%c0_123, %c0_124] : memref<16x32xf32, #tpu.memory_space<vmem>>, vector<16x32xf32>
    tpu.vector_store %arg16[%c0_123, %c0_124], %246 {strides = array<i32>} : memref<16x32xf32, #tpu.memory_space<vmem>>, vector<16x32xf32>,
    return
  }
}

</mosaic_0001>

<bundles_post_ra>
// kernel: tpu_custom_call.1
= control target key start
LH: loop header
LB: loop body
LE: loop exit
PB: predicated region body
PF: predicated region fallthrough
CT: control target
= control target key end

     0   :  { %s2203_s0 = inlined_call_operand.vmem [shape: f32[16,32], index: 0, kind: input, shape index: {}]   ;;  %s2204_s1 = inlined_call_operand.vmem [shape: f32[16,32], index: 1, kind: input, shape index: {}]   ;;  %s2205_s2 = inlined_call_operand.vmem [shape: f32[16,64], index: 2, kind: input, shape index: {}]   ;;  %s2206_s3 = inlined_call_operand.vmem [shape: f32[64,32], index: 3, kind: input, shape index: {}]   ;;  %s2207_s4 = inlined_call_operand.vmem [shape: f32[2,1,32], index: 4, kind: input, shape index: {}]   ;;  %s2208_s5 = inlined_call_operand.vmem [shape: f32[2,1,32], index: 5, kind: input, shape index: {}]   ;;  %s2209_s6 = inlined_call_operand.vmem [shape: f32[2,32,96], index: 6, kind: input, shape index: {}]   ;;  %s2210_s7 = inlined_call_operand.vmem [shape: f32[2,1,96], index: 7, kind: input, shape index: {}]   ;;  %s2211_s8 = inlined_call_operand.vmem [shape: f32[2,32,32], index: 8, kind: input, shape index: {}]   ;;  %s2212_s9 = inlined_call_operand.vmem [shape: f32[2,1,32], index: 9, kind: input, shape index: {}]   ;;  %s2213_s10 = inlined_call_operand.vmem [shape: f32[2,1,32], index: 10, kind: input, shape index: {}]   ;;  %s2214_s11 = inlined_call_operand.vmem [shape: f32[2,1,32], index: 11, kind: input, shape index: {}]   ;;  %s2215_s12 = inlined_call_operand.vmem [shape: f32[2,32,128], index: 12, kind: input, shape index: {}]   ;;  %s2216_s13 = inlined_call_operand.vmem [shape: f32[2,1,128], index: 13, kind: input, shape index: {}]   ;;  %s2217_s14 = inlined_call_operand.vmem [shape: f32[2,128,32], index: 14, kind: input, shape index: {}]   ;;  %s2218_s15 = inlined_call_operand.vmem [shape: f32[2,1,32], index: 15, kind: input, shape index: {}]   ;;  %s2219_s16 = inlined_call_operand.hbm [shape: f32[16,32], index: 16, kind: output, shape index: {}]  }
   0x1   :  { %2221 = sst [smem:[#allocation5_spill]] %s2203_s0 }
   0x2   :  { %s2222_s23 = sld [smem:[#allocation5_spill]]  ;;  %v57_v1 = vld [vmem:[%s2204_s1 + $0x8] sm:$0xff]  ;;  %vm72_vm0 = vcmask 261120   ;;  %v56_v4 = vld [vmem:[%s2204_s1] sm:$0xff] }
   0x8   :  { %v55_v0 = vld [vmem:[%s2222_s23 + $0x8] sm:$0xff]  ;;  %v54_v2 = vld [vmem:[%s2222_s23] sm:$0xff] }
   0x9   :  { %v1579_v3 = vadd.f32 %v57_v1, %v55_v0  ;;  %v1584_v5 = vadd.f32 %v56_v4, %v54_v2 }
   0xb   :  { %v76_v6 = vsel %vm72_vm0, %v1579_v3, 0.0  ;;  %v73_v7 = vsel %vm72_vm0, %v1584_v5, 0.0  ;;  %v80_v8 = vmul.f32 %v1579_v3, %v1579_v3  ;;  %v79_v9 = vmul.f32 %v1584_v5, %v1584_v5 }
   0xc   :  { %77 = vadd.xlane.f32.xlu1 %v76_v6  ;;  %74 = vadd.xlane.f32.xlu0 %v73_v7 }
   0xd   :  { %21 = vsyncpa [#allocation3], 0  ;;  %v84_v10 = vsel %vm72_vm0, %v80_v8, 0.0  ;;  %v81_v11 = vsel %vm72_vm0, %v79_v9, 0.0  ;;  %v1478_v12 = vmov 31.0   ;;  %v175_v20 = vld [vmem:[%s2209_s6 + $0x18] sm:$0xff] }
   0xe   :  { %1394 = vrcp.f32 %v1478_v12  ;;  %v174_v21 = vld [vmem:[%s2209_s6 + $0x10] sm:$0xff]  ;;  %198 = vmatpush.msra.mxu0 %v175_v20  ;;  %v173_v22 = vld [vmem:[%s2209_s6 + $0x8] sm:$0xff]  ;;  %v172_v26 = vld [vmem:[%s2209_s6] sm:$0xff]  ;;  %s1479_s24 = smov 32   ;;  %vm390_vm14 = vcmask 523264   ;;  %s1482_s25 = smov [#allocation2]  }
   0xf   :  { %v1621_v46 = vld [vmem:[%s2206_s3 + $0x28] sm:$0xff]  ;;  %v1628_v59 = vld [vmem:[%s2206_s3 + $0x38] sm:$0xff]  ;;  %v1633_v60 = vld [vmem:[%s2206_s3 + $0x20] sm:$0xff]  ;;  %s1247_s27 = sshll.u32 %s2219_s16, 4  ;;  %s1484_s28 = smov 8   ;;  %s1248_s27 = int_to_ptr.hbm [resolvable:$true] %s1247_s27 }
  0x10   :  { %199 = vmatpush.msra.mxu0 %v174_v21  ;;  %v1638_v61 = vld [vmem:[%s2206_s3] sm:$0xff]  ;;  %231 = vrot.lane.b32.xlu2 %v1628_v59, %s1479_s24  ;;  %v1649_v63 = vld [vmem:[%s2206_s3 + $0x30] sm:$0xff] }
  0x11   :  { %v1378_v8 = vld [vmem:[%s2207_s4] ss:$0 sm:$0xff] }
  0x12   :  { %200 = vmatpush.msra.mxu0 %v173_v22  ;;  %v1379_v22 = vld [vmem:[%s2208_s5] ss:$0 sm:$0xff] }
  0x14   :  { %85 = vadd.xlane.f32.xlu1 %v84_v10  ;;  %82 = vadd.xlane.f32.xlu0 %v81_v11  ;;  %v1395_v13 = vpop.eup %1394 }
  0x15   :  { %v94_v14 = vmul.f32 31.0, %v1395_v13  ;;  %vm98_vm1 = vweird.f32 %v1395_v13  ;;  %201 = vmatpush.msra.mxu0 %v172_v26 }
  0x17   :  { %v95_v15 = vsub.f32 1.0, %v94_v14  ;;  %v1661_v14 = vld [vmem:[%s2206_s3 + $0x18] sm:$0xff] }
  0x18   :  { %229 = vrot.lane.b32.xlu2 %v1649_v63, %s1479_s24 }
  0x19   :  { %v96_v17 = vmul.f32 %v1395_v13, %v95_v15 }
  0x1b   :  { %v97_v24 = vadd.f32 %v1395_v13, %v96_v17 }
  0x1d   :  { %v1614_v28 = vsel %vm98_vm1, %v1395_v13, %v97_v24 }
  0x20   :  { %223 = vrot.lane.b32.xlu2 %v1661_v14, %s1479_s24 }
  0x28   :  { %227 = vrot.lane.b32.xlu0 %v1621_v46, %s1479_s24 }
  0x2d   :  { %225 = vrot.lane.b32.xlu1 %v1633_v60, %s1479_s24 }
  0x30   :  { %217 = vrot.lane.b32.xlu0 %v1638_v61, %s1479_s24 }
  0x7f   :  { %v78_v16 = vpop.xlane.xlu1 %77  ;;  %v75_v19 = vpop.xlane.xlu0 %74 }
  0x80   :  { %v1596_v18 = vmul.f32 0.03125, %v78_v16  ;;  %v1607_v23 = vmul.f32 0.03125, %v75_v19 }
  0x82   :  { %v90_v25 = vmul.f32 %v1596_v18, %v78_v16  ;;  %v89_v27 = vmul.f32 %v1607_v23, %v75_v19  ;;  %v158_v9 = vsub.f32 %v1584_v5, %v1607_v23 }
  0x84   :  { %v163_v17 = vmul.f32 %v1378_v8, %v158_v9 }
  0x87   :  { %v86_v29 = vpop.xlane.xlu1 %85  ;;  %v83_v31 = vpop.xlane.xlu0 %82 }
  0x88   :  { %v92_v30 = vsub.f32 %v86_v29, %v90_v25  ;;  %v91_v32 = vsub.f32 %v83_v31, %v89_v27  ;;  %v159_v25 = vsub.f32 %v1579_v3, %v1596_v18  ;;  %v64_v31 = vld [vmem:[%s2206_s3 + $0x10] sm:$0xff]  ;;  %v63_v18 = vld [vmem:[%s2206_s3 + $0x8] sm:$0xff]  ;;  %s1480_s3 = smov 96  }
  0x89   :  { %221 = vrot.lane.b32.xlu2 %v64_v31, %s1479_s24 }
  0x8a   :  { %v101_v33 = vmul.f32 %v1614_v28, %v92_v30  ;;  %v100_v34 = vmul.f32 %v1614_v28, %v91_v32 }
  0x8c   :  { %v103_v35 = vmax.f32 %v101_v33, 0.0  ;;  %v102_v36 = vmax.f32 %v100_v34, 0.0  ;;  %v164_v33 = vmul.f32 %v1378_v8, %v159_v25 }
  0x8e   :  { %1396 = vrsqrt.f32 %v103_v35  ;;  %vm123_vm2 = vcmp.eq.f32.partialorder %v103_v35, inf  ;;  %v126_v52 = vand.u32 2147483648, %v103_v35  ;;  %vm111_vm3 = vcmp.eq.f32.partialorder %v102_v36, inf }
  0x8f   :  { %1398 = vrsqrt.f32 %v102_v36  ;;  %v114_v53 = vand.u32 2147483648, %v102_v36  ;;  %vm125_vm4 = vcmp.eq.f32.partialorder %v103_v35, 0.0  ;;  %vm113_vm5 = vcmp.eq.f32.partialorder %v102_v36, 0.0 }
  0x91   :  { %219 = vrot.lane.b32.xlu2 %v63_v18, %s1479_s24  ;;  %s1481_s24 = smov 64  }
  0x94   :  { %v1397_v37 = vpop.eup %1396 }
  0x95   :  { %v1399_v38 = vpop.eup %1398  ;;  %v117_v39 = vmul.f32 %v1397_v37, %v103_v35 }
  0x96   :  { %v105_v40 = vmul.f32 %v1399_v38, %v102_v36 }
  0x97   :  { %v118_v41 = vmul.f32 %v1397_v37, %v117_v39 }
  0x98   :  { %v106_v42 = vmul.f32 %v1399_v38, %v105_v40 }
  0x99   :  { %v119_v43 = vmul.f32 0.5, %v118_v41 }
  0x9a   :  { %v107_v44 = vmul.f32 0.5, %v106_v42 }
  0x9b   :  { %v120_v45 = vsub.f32 1.5, %v119_v43  ;;  %v1694_v43 = vpop.permute.xlu0 %227 }
  0x9c   :  { %v108_v47 = vsub.f32 1.5, %v107_v44 }
  0x9d   :  { %v121_v48 = vmul.f32 %v1397_v37, %v120_v45 }
  0x9e   :  { %v109_v49 = vmul.f32 %v1399_v38, %v108_v47  ;;  %v1380_v38 = vld [vmem:[%s2210_s7] ss:$0 sm:$0xff] }
  0x9f   :  { %v122_v50 = vmul.f32 %v121_v48, %v103_v35 }
  0xa0   :  { %v110_v51 = vmul.f32 %v109_v49, %v102_v36 }
  0xa1   :  { %v124_v54 = vsel %vm123_vm2, %v103_v35, %v122_v50 }
  0xa2   :  { %v112_v55 = vsel %vm111_vm3, %v102_v36, %v110_v51  ;;  %v127_v56 = vsel %vm125_vm4, %v126_v52, %v124_v54  ;;  %v1680_v36 = vpop.permute.xlu2 %231  ;;  %v1709_v51 = vpop.permute.xlu1 %225 }
  0xa3   :  { %v115_v57 = vsel %vm113_vm5, %v114_v53, %v112_v55  ;;  %v129_v58 = vadd.f32 1e-06, %v127_v56  ;;  %v1711_v52 = vpop.permute.xlu0 %217 }
  0xa4   :  { %v128_v62 = vadd.f32 1e-06, %v115_v57 }
  0xa5   :  { %1400 = vrcp.f32 %v129_v58  ;;  %v155_v20 = vand.u32 2147483648, %v129_v58  ;;  %vm149_vm11 = vweird.f32 %v129_v58  ;;  %v153_v23 = vand.u32 2147483647, %v129_v58 }
  0xa6   :  { %1402 = vrcp.f32 %v128_v62  ;;  %v141_v10 = vand.u32 2147483648, %v128_v62  ;;  %v139_v13 = vand.u32 2147483647, %v128_v62  ;;  %vm135_vm7 = vweird.f32 %v128_v62 }
  0xa7   :  { %v156_v29 = vor.u32 1.1754944e-38, %v155_v20  ;;  %vm154_vm13 = vcmp.eq.f32.partialorder %v153_v23, 8.507059e+37 }
  0xa8   :  { %v142_v19 = vor.u32 1.1754944e-38, %v141_v10  ;;  %vm140_vm10 = vcmp.eq.f32.partialorder %v139_v13, 8.507059e+37 }
  0xaa   :  { %v1682_v37 = vpop.permute.xlu2 %229 }
  0xab   :  { %v1401_v0 = vpop.eup %1400 }
  0xac   :  { %v1403_v1 = vpop.eup %1402  ;;  %v145_v2 = vmul.f32 %v1401_v0, %v129_v58  ;;  %vm150_vm8 = vweird.f32 %v1401_v0 }
  0xad   :  { %v131_v4 = vmul.f32 %v1403_v1, %v128_v62  ;;  %vm136_vm6 = vweird.f32 %v1403_v1  ;;  %vm151_vm12 = vmor %vm149_vm11, %vm150_vm8 }
  0xae   :  { %v146_v6 = vsub.f32 1.0, %v145_v2  ;;  %vm137_vm9 = vmor %vm135_vm7, %vm136_vm6 }
  0xaf   :  { %v132_v7 = vsub.f32 1.0, %v131_v4 }
  0xb0   :  { %v147_v11 = vmul.f32 %v1401_v0, %v146_v6 }
  0xb1   :  { %v133_v12 = vmul.f32 %v1403_v1, %v132_v7 }
  0xb2   :  { %v148_v16 = vadd.f32 %v1401_v0, %v147_v11  ;;  %v1691_v42 = vpop.permute.xlu2 %223 }
  0xb3   :  { %v134_v15 = vadd.f32 %v1403_v1, %v133_v12 }
  0xb4   :  { %v152_v27 = vsel %vm151_vm12, %v1401_v0, %v148_v16 }
  0xb5   :  { %v138_v21 = vsel %vm137_vm9, %v1403_v1, %v134_v15  ;;  %v157_v32 = vsel %vm154_vm13, %v156_v29, %v152_v27 }
  0xb6   :  { %v143_v24 = vsel %vm140_vm10, %v142_v19, %v138_v21  ;;  %v166_v34 = vmul.f32 %v164_v33, %v157_v32 }
  0xb7   :  { %v165_v26 = vmul.f32 %v163_v17, %v143_v24 }
  0xb8   :  { %v171_v35 = vadd.f32 %v1379_v22, %v166_v34 }
  0xb9   :  { %v170_v30 = vadd.f32 %v1379_v22, %v165_v26 }
  0xbb   :  { %1259 = vmatmul.msk.f32.vlgmr.msra.gmra.mxu0 %vm72_vm0, %v170_v30 }
  0xc3   :  { %1260 = vmatmul.msk.f32.gmra.mxu0 %vm72_vm0, %v171_v35 }
  0xe3   :  { %v1706_v50 = vpop.permute.xlu2 %221 }
  0xeb   :  { %v1722_v56 = vpop.permute.xlu2 %219 }
 0x138   :  { %v203_v39 = vpop.f32.mrf.mxu0 }
 0x139   :  { %v1687_v40 = vadd.f32 %v1380_v38, %v203_v39 }
 0x13b   :  { %v247_v41 = vmul.f32 %v1682_v37, %v1687_v40  ;;  %v245_v53 = vmul.f32 %v1709_v51, %v1687_v40  ;;  %v241_v54 = vmul.f32 %v1711_v52, %v1687_v40  ;;  %v243_v55 = vmul.f32 %v1706_v50, %v1687_v40 }
 0x13d   :  { %341 = vrot.lane.b32.xlu1 %v247_v41, %s1480_s3 }
 0x140   :  { %v206_v44 = vpop.f32.mrf.mxu0 }
 0x141   :  { %v1696_v45 = vadd.f32 %v1380_v38, %v206_v44 }
 0x143   :  { %v248_v47 = vmul.f32 %v1680_v36, %v1696_v45  ;;  %v244_v48 = vmul.f32 %v1691_v42, %v1696_v45  ;;  %v246_v49 = vmul.f32 %v1694_v43, %v1696_v45  ;;  %v242_v57 = vmul.f32 %v1722_v56, %v1696_v45 }
 0x145   :  { %343 = vrot.lane.b32.xlu2 %v248_v47, %s1480_s3  ;;  %335 = vrot.lane.b32.xlu1 %v244_v48, %s1480_s3 }
 0x146   :  { %339 = vrot.lane.b32.xlu0 %v246_v49, %s1480_s3 }
 0x14d   :  { %337 = vrot.lane.b32.xlu2 %v245_v53, %s1480_s3  ;;  %329 = vrot.lane.b32.xlu1 %v241_v54, %s1480_s3 }
 0x14e   :  { %333 = vrot.lane.b32.xlu0 %v243_v55, %s1480_s3  ;;  %v1813_v55 = vld [vmem:[%s2205_s2 + $0x8] sm:$0xff] }
 0x155   :  { %331 = vrot.lane.b32.xlu2 %v242_v57, %s1480_s3  ;;  %259 = vrot.lane.b32.xlu1 %v1621_v46, %s1481_s24 }
 0x156   :  { %263 = vrot.lane.b32.xlu0 %v1628_v59, %s1481_s24 }
 0x15d   :  { %261 = vrot.lane.b32.xlu2 %v1649_v63, %s1481_s24  ;;  %253 = vrot.lane.b32.xlu1 %v64_v31, %s1481_s24 }
 0x15e   :  { %257 = vrot.lane.b32.xlu0 %v1633_v60, %s1481_s24 }
 0x165   :  { %255 = vrot.lane.b32.xlu2 %v1661_v14, %s1481_s24 }
 0x166   :  { %251 = vrot.lane.b32.xlu0 %v63_v18, %s1481_s24  ;;  %v1798_v18 = vld [vmem:[%s2205_s2] sm:$0xff] }
 0x16d   :  { %249 = vrot.lane.b32.xlu2 %v1638_v61, %s1481_s24 }
 0x19f   :  { %v344_v46 = vpop.permute.xlu2 %343 }
 0x1a0   :  { %1261 = vmatpush.xpose.msk.msra.mxu1 %vm72_vm0, %v344_v46 }
 0x1a7   :  { %v338_v58 = vpop.permute.xlu2 %337 }
 0x1af   :  { %v342_v59 = vpop.permute.xlu1 %341  ;;  %v332_v63 = vpop.permute.xlu2 %331 }
 0x1b0   :  { %1262 = vmatpush.xpose.msk.msra.mxu1 %vm72_vm0, %v342_v59 }
 0x1b7   :  { %v336_v62 = vpop.permute.xlu1 %335  ;;  %v1746_v2 = vpop.permute.xlu2 %261 }
 0x1b8   :  { %v340_v0 = vpop.permute.xlu0 %339  ;;  %v279_v6 = vmul.f32 %v1746_v2, %v1687_v40 }
 0x1b9   :  { %1263 = vmatpush.xpose.msk.msra.mxu1 %vm72_vm0, %v340_v0 }
 0x1bd   :  { %1264 = vmatpush.xpose.msk.msra.mxu1 %vm72_vm0, %v338_v58 }
 0x1bf   :  { %v330_v60 = vpop.permute.xlu1 %329  ;;  %v1758_v9 = vpop.permute.xlu2 %255 }
 0x1c0   :  { %v334_v1 = vpop.permute.xlu0 %333  ;;  %v276_v11 = vmul.f32 %v1758_v9, %v1696_v45 }
 0x1c1   :  { %1265 = vmatpush.xpose.msk.msra.mxu1 %vm72_vm0, %v336_v62 }
 0x1c5   :  { %1266 = vmatpush.xpose.msk.msra.mxu1 %vm72_vm0, %v334_v1 }
 0x1c7   :  { %v1749_v61 = vpop.permute.xlu1 %259  ;;  %v1778_v19 = vpop.permute.xlu2 %249 }
 0x1c8   :  { %v1751_v4 = vpop.permute.xlu0 %263  ;;  %v278_v14 = vmul.f32 %v1749_v61, %v1696_v45  ;;  %v273_v21 = vmul.f32 %v1778_v19, %v1687_v40 }
 0x1c9   :  { %v280_v7 = vmul.f32 %v1751_v4, %v1696_v45  ;;  %1267 = vmatpush.xpose.msk.msra.mxu1 %vm72_vm0, %v332_v63 }
 0x1cb   :  { %v1338_v8 = vpack.i.bf16 %v279_v6, %v280_v7 }
 0x1cd   :  { %1268 = vmatpush.xpose.msk.msra.mxu1 %vm72_vm0, %v330_v60  ;;  %1339 = vrot.lane.b32.xlu1 %v1338_v8, %s1481_s24 }
 0x1cf   :  { %v1762_v10 = vpop.permute.xlu1 %253 }
 0x1d0   :  { %v275_v12 = vmul.f32 %v1762_v10, %v1687_v40  ;;  %1269 = vmatmul.msk.f32.vlgmr.msra.gmra.mxu1 %vm72_vm0, %v1687_v40  ;;  %v1770_v13 = vpop.permute.xlu0 %257 }
 0x1d1   :  { %v277_v15 = vmul.f32 %v1770_v13, %v1687_v40 }
 0x1d2   :  { %v1348_v16 = vpack.i.bf16 %v275_v12, %v276_v11  ;;  %v447_v11 = vld [vmem:[%s2211_s8 + $0x18] sm:$0xff]  ;;  %v446_v12 = vld [vmem:[%s2211_s8 + $0x10] sm:$0xff] }
 0x1d3   :  { %v1343_v17 = vpack.i.bf16 %v277_v15, %v278_v14  ;;  %466 = vmatpush.msra.mxu3 %v447_v11  ;;  %v445_v14 = vld [vmem:[%s2211_s8 + $0x8] sm:$0xff] }
 0x1d5   :  { %1349 = vrot.lane.b32.xlu1 %v1348_v16, %s1481_s24  ;;  %1344 = vrot.lane.b32.xlu0 %v1343_v17, %s1481_s24 }
 0x1d6   :  { %467 = vmatpush.msra.mxu3 %v446_v12 }
 0x1d8   :  { %1270 = vmatmul.msk.f32.gmra.mxu1 %vm72_vm0, %v1696_v45  ;;  %v1782_v20 = vpop.permute.xlu0 %251  ;;  %468 = vmatpush.msra.mxu3 %v445_v14 }
 0x1d9   :  { %v274_v22 = vmul.f32 %v1782_v20, %v1696_v45 }
 0x1db   :  { %v1353_v23 = vpack.i.bf16 %v273_v21, %v274_v22  ;;  %v444_v22 = vld [vmem:[%s2211_s8] sm:$0xff] }
 0x1dc   :  { %469 = vmatpush.msra.mxu3 %v444_v22 }
 0x1dd   :  { %1354 = vrot.lane.b32.xlu0 %v1353_v23, %s1481_s24 }
 0x23f   :  { %v1340_v24 = vpop.permute.xlu1 %1339 }
 0x240   :  { %v1342_v25 = vunpack.i.h.bf16 %v1340_v24  ;;  %v1341_v26 = vunpack.i.l.bf16 %v1340_v24 }
 0x242   :  { %v320_v27 = vsel %vm72_vm0, %v1341_v26, %v1680_v36  ;;  %v319_v29 = vsel %vm72_vm0, %v1342_v25, %v1682_v37 }
 0x243   :  { %417 = vmatpush.msra.mxu2 %v320_v27  ;;  %v1381_v27 = vld [vmem:[%s2212_s9] ss:$0 sm:$0xff] }
 0x245   :  { %418 = vmatpush.msra.mxu2 %v319_v29 }
 0x247   :  { %v1350_v30 = vpop.permute.xlu1 %1349  ;;  %v1345_v31 = vpop.permute.xlu0 %1344 }
 0x248   :  { %v1347_v32 = vunpack.i.h.bf16 %v1345_v31  ;;  %v1346_v33 = vunpack.i.l.bf16 %v1345_v31  ;;  %v1351_v34 = vunpack.i.l.bf16 %v1350_v30  ;;  %v1352_v38 = vunpack.i.h.bf16 %v1350_v30 }
 0x24a   :  { %v318_v35 = vsel %vm72_vm0, %v1346_v33, %v1694_v43  ;;  %v317_v39 = vsel %vm72_vm0, %v1347_v32, %v1709_v51  ;;  %v316_v44 = vsel %vm72_vm0, %v1351_v34, %v1691_v42  ;;  %v315_v53 = vsel %vm72_vm0, %v1352_v38, %v1706_v50 }
 0x24b   :  { %419 = vmatpush.msra.mxu2 %v318_v35 }
 0x24d   :  { %v384_v40 = vpop.f32.mrf.mxu1  ;;  %420 = vmatpush.msra.mxu2 %v317_v39 }
 0x24e   :  { %v385_v41 = vadd.f32 %v384_v40, %v1798_v18 }
 0x24f   :  { %v1355_v45 = vpop.permute.xlu0 %1354  ;;  %421 = vmatpush.msra.mxu2 %v316_v44 }
 0x250   :  { %v1357_v47 = vunpack.i.h.bf16 %v1355_v45  ;;  %v1356_v48 = vunpack.i.l.bf16 %v1355_v45  ;;  %v391_v49 = vsel %vm390_vm14, %v385_v41, -inf }
 0x251   :  { %392 = vmax.xlane.f32.xlu2 %v391_v49  ;;  %422 = vmatpush.msra.mxu2 %v315_v53  ;;  %v580_v53 = vld [vmem:[%s2215_s12 + $0x8] sm:$0xff] }
 0x252   :  { %v314_v54 = vsel %vm72_vm0, %v1356_v48, %v1722_v56  ;;  %v313_v57 = vsel %vm72_vm0, %v1357_v47, %v1711_v52  ;;  %v582_v47 = vld [vmem:[%s2215_s12 + $0x18] sm:$0xff] }
 0x253   :  { %423 = vmatpush.msra.mxu2 %v314_v54  ;;  %605 = vmatpush.msrb.mxu0 %v582_v47 }
 0x255   :  { %v387_v46 = vpop.f32.mrf.mxu1  ;;  %424 = vmatpush.msra.mxu2 %v313_v57  ;;  %v579_v57 = vld [vmem:[%s2215_s12] sm:$0xff] }
 0x256   :  { %v388_v58 = vadd.f32 %v387_v46, %v1813_v55 }
 0x258   :  { %v394_v59 = vsel %vm390_vm14, %v388_v58, -inf }
 0x259   :  { %395 = vmax.xlane.f32.xlu1 %v394_v59 }
 0x2c4   :  { %v393_v62 = vpop.xlane.xlu2 %392 }
 0x2c5   :  { %v397_v63 = vsub.f32 %v385_v41, %v393_v62 }
 0x2c7   :  { %v399_v0 = vmul.f32 1.442695, %v397_v63 }
 0x2c9   :  { %1404 = vpow2.f32 %v399_v0 }
 0x2cc   :  { %v396_v60 = vpop.xlane.xlu1 %395 }
 0x2cd   :  { %v398_v1 = vsub.f32 %v388_v58, %v396_v60 }
 0x2cf   :  { %v1405_v6 = vpop.eup %1404  ;;  %v401_v7 = vmul.f32 1.442695, %v398_v1 }
 0x2d0   :  { %1271 = vmatmul.msk.f32.vlgmr.msra.gmra.mxu2 %vm390_vm14, %v1405_v6 }
 0x2d1   :  { %1406 = vpow2.f32 %v401_v7 }
 0x2d7   :  { %v1407_v8 = vpop.eup %1406 }
 0x2d8   :  { %1272 = vmatmul.msk.f32.gmra.mxu2 %vm390_vm14, %v1407_v8 }
 0x353   :  { %v426_v15 = vpop.f32.mrf.mxu2 }
 0x354   :  { %1408 = vrcp.f32 %v426_v15 }
 0x35a   :  { %v1409_v16 = vpop.eup %1408 }
 0x35b   :  { %436 = vrot.lane.b32.xlu0 %v1409_v16, %s1480_s3  ;;  %v429_v17 = vpop.f32.mrf.mxu2 }
 0x35c   :  { %1410 = vrcp.f32 %v429_v17 }
 0x362   :  { %v1411_v21 = vpop.eup %1410 }
 0x363   :  { %438 = vrot.lane.b32.xlu0 %v1411_v21, %s1480_s3 }
 0x3cd   :  { %v437_v23 = vpop.permute.xlu0 %436 }
 0x3ce   :  { %v442_v24 = vmul.f32 %v437_v23, %v426_v15 }
 0x3d0   :  { %1273 = vmatmul.msk.f32.vlgmr.msra.gmra.mxu3 %vm72_vm0, %v442_v24 }
 0x3d5   :  { %v439_v25 = vpop.permute.xlu0 %438 }
 0x3d6   :  { %v443_v26 = vmul.f32 %v439_v25, %v429_v17 }
 0x3d8   :  { %1274 = vmatmul.msk.f32.gmra.mxu3 %vm72_vm0, %v443_v26 }
 0x453   :  { %v471_v29 = vpop.f32.mrf.mxu3 }
 0x454   :  { %v477_v30 = vadd.f32 %v471_v29, %v1584_v5  ;;  %v649_v29 = vld [vmem:[%s2217_s14 + $0x78] sm:$0xff] }
 0x455   :  { %650 = vmatpush.msrb.mxu3 %v649_v29  ;;  %v643_v29 = vld [vmem:[%s2217_s14 + $0x48] sm:$0xff] }
 0x456   :  { %v1841_v31 = vadd.f32 %v1381_v27, %v477_v30  ;;  %v648_v30 = vld [vmem:[%s2217_s14 + $0x70] sm:$0xff] }
 0x457   :  { %651 = vmatpush.msrb.mxu3 %v648_v30  ;;  %v642_v30 = vld [vmem:[%s2217_s14 + $0x40] sm:$0xff] }
 0x458   :  { %v487_v32 = vsel %vm72_vm0, %v1841_v31, 0.0  ;;  %v493_v33 = vmul.f32 %v1841_v31, %v1841_v31 }
 0x459   :  { %488 = vadd.xlane.f32.xlu0 %v487_v32 }
 0x45a   :  { %v495_v34 = vsel %vm72_vm0, %v493_v33, 0.0  ;;  %v647_v33 = vld [vmem:[%s2217_s14 + $0x68] sm:$0xff] }
 0x45b   :  { %496 = vadd.xlane.f32.xlu2 %v495_v34  ;;  %v474_v35 = vpop.f32.mrf.mxu3  ;;  %652 = vmatpush.msrb.mxu3 %v647_v33  ;;  %v640_v33 = vld [vmem:[%s2217_s14 + $0x30] sm:$0xff] }
 0x45c   :  { %v478_v38 = vadd.f32 %v474_v35, %v1579_v3  ;;  %v581_v3 = vld [vmem:[%s2215_s12 + $0x10] sm:$0xff]  ;;  %v646_v35 = vld [vmem:[%s2217_s14 + $0x60] sm:$0xff] }
 0x45d   :  { %606 = vmatpush.msrb.mxu0 %v581_v3  ;;  %653 = vmatpush.msrb.mxu3 %v646_v35  ;;  %v638_v35 = vld [vmem:[%s2217_s14 + $0x20] sm:$0xff] }
 0x45e   :  { %v1849_v39 = vadd.f32 %v1381_v27, %v478_v38 }
 0x45f   :  { %607 = vmatpush.msrb.mxu0 %v580_v53 }
 0x460   :  { %v494_v5 = vmul.f32 %v1849_v39, %v1849_v39  ;;  %v490_v41 = vsel %vm72_vm0, %v1849_v39, 0.0 }
 0x461   :  { %608 = vmatpush.msrb.mxu0 %v579_v57 }
 0x462   :  { %v498_v40 = vsel %vm72_vm0, %v494_v5, 0.0 }
 0x463   :  { %499 = vadd.xlane.f32.xlu1 %v498_v40  ;;  %491 = vadd.xlane.f32.xlu2 %v490_v41 }
 0x4cc   :  { %v489_v44 = vpop.xlane.xlu0 %488 }
 0x4cd   :  { %v1856_v45 = vmul.f32 0.03125, %v489_v44 }
 0x4ce   :  { %v497_v48 = vpop.xlane.xlu2 %496 }
 0x4cf   :  { %v503_v49 = vmul.f32 %v1856_v45, %v489_v44 }
 0x4d1   :  { %v505_v54 = vsub.f32 %v497_v48, %v503_v49  ;;  %v565_v49 = vsub.f32 %v1841_v31, %v1856_v45  ;;  %v1383_v45 = vld [vmem:[%s2214_s11] ss:$0 sm:$0xff] }
 0x4d3   :  { %v507_v46 = vmul.f32 %v505_v54, %v1614_v28  ;;  %v1382_v54 = vld [vmem:[%s2213_s10] ss:$0 sm:$0xff] }
 0x4d5   :  { %v509_v58 = vmax.f32 %v507_v46, 0.0 }
 0x4d6   :  { %v492_v59 = vpop.xlane.xlu2 %491  ;;  %v500_v0 = vpop.xlane.xlu1 %499 }
 0x4d7   :  { %1412 = vrsqrt.f32 %v509_v58  ;;  %v1872_v62 = vmul.f32 0.03125, %v492_v59  ;;  %vm518_vm15 = vcmp.eq.f32.partialorder %v509_v58, inf  ;;  %v521_v21 = vand.u32 2147483648, %v509_v58 }
 0x4d8   :  { %vm520_vm1 = vcmp.eq.f32.partialorder %v509_v58, 0.0 }
 0x4d9   :  { %v504_v63 = vmul.f32 %v1872_v62, %v492_v59 }
 0x4db   :  { %v506_v60 = vsub.f32 %v500_v0, %v504_v63  ;;  %v570_v63 = vmul.f32 %v1382_v54, %v565_v49 }
 0x4dd   :  { %v1413_v1 = vpop.eup %1412  ;;  %v508_v7 = vmul.f32 %v506_v60, %v1614_v28 }
 0x4de   :  { %v512_v6 = vmul.f32 %v1413_v1, %v509_v58 }
 0x4df   :  { %v510_v11 = vmax.f32 %v508_v7, 0.0 }
 0x4e0   :  { %v513_v8 = vmul.f32 %v1413_v1, %v512_v6 }
 0x4e1   :  { %1414 = vrsqrt.f32 %v510_v11  ;;  %vm530_vm2 = vcmp.eq.f32.partialorder %v510_v11, inf  ;;  %v533_v40 = vand.u32 2147483648, %v510_v11  ;;  %vm532_vm3 = vcmp.eq.f32.partialorder %v510_v11, 0.0 }
 0x4e2   :  { %v514_v12 = vmul.f32 0.5, %v513_v8 }
 0x4e4   :  { %v515_v14 = vsub.f32 1.5, %v514_v12 }
 0x4e6   :  { %v516_v15 = vmul.f32 %v1413_v1, %v515_v14  ;;  %v566_v14 = vsub.f32 %v1849_v39, %v1872_v62  ;;  %v644_v62 = vld [vmem:[%s2217_s14 + $0x50] sm:$0xff] }
 0x4e7   :  { %v1415_v16 = vpop.eup %1414 }
 0x4e8   :  { %v517_v17 = vmul.f32 %v516_v15, %v509_v58  ;;  %v524_v22 = vmul.f32 %v1415_v16, %v510_v11 }
 0x4ea   :  { %v519_v23 = vsel %vm518_vm15, %v509_v58, %v517_v17  ;;  %v525_v24 = vmul.f32 %v1415_v16, %v524_v22  ;;  %v571_v22 = vmul.f32 %v1382_v54, %v566_v14 }
 0x4eb   :  { %v522_v25 = vsel %vm520_vm1, %v521_v21, %v519_v23 }
 0x4ec   :  { %v535_v26 = vadd.f32 1e-06, %v522_v25  ;;  %v526_v27 = vmul.f32 0.5, %v525_v24 }
 0x4ee   :  { %1416 = vrcp.f32 %v535_v26  ;;  %v527_v32 = vsub.f32 1.5, %v526_v27  ;;  %v548_v53 = vand.u32 2147483648, %v535_v26  ;;  %v546_v46 = vand.u32 2147483647, %v535_v26  ;;  %v645_v27 = vld [vmem:[%s2217_s14 + $0x58] sm:$0xff] }
 0x4ef   :  { %vm542_vm5 = vweird.f32 %v535_v26  ;;  %654 = vmatpush.msrb.mxu3 %v645_v27 }
 0x4f0   :  { %v528_v34 = vmul.f32 %v1415_v16, %v527_v32  ;;  %v549_v59 = vor.u32 1.1754944e-38, %v548_v53  ;;  %vm547_vm7 = vcmp.eq.f32.partialorder %v546_v46, 8.507059e+37  ;;  %v641_v32 = vld [vmem:[%s2217_s14 + $0x38] sm:$0xff] }
 0x4f1   :  { %655 = vmatpush.msrb.mxu3 %v644_v62 }
 0x4f2   :  { %v529_v38 = vmul.f32 %v528_v34, %v510_v11  ;;  %v639_v34 = vld [vmem:[%s2217_s14 + $0x28] sm:$0xff] }
 0x4f3   :  { %656 = vmatpush.msrb.mxu3 %v643_v29 }
 0x4f4   :  { %v1417_v5 = vpop.eup %1416  ;;  %v531_v44 = vsel %vm530_vm2, %v510_v11, %v529_v38  ;;  %v637_v38 = vld [vmem:[%s2217_s14 + $0x18] sm:$0xff] }
 0x4f5   :  { %v538_v41 = vmul.f32 %v1417_v5, %v535_v26  ;;  %v534_v47 = vsel %vm532_vm3, %v533_v40, %v531_v44  ;;  %vm543_vm4 = vweird.f32 %v1417_v5  ;;  %657 = vmatpush.msrb.mxu3 %v642_v30  ;;  %v635_v40 = vld [vmem:[%s2217_s14 + $0x8] sm:$0xff]  ;;  %v1384_v44 = vld [vmem:[%s2216_s13] ss:$0 sm:$0xff] }
 0x4f6   :  { %v536_v48 = vadd.f32 1e-06, %v534_v47  ;;  %vm544_vm6 = vmor %vm542_vm5, %vm543_vm4 }
 0x4f7   :  { %v539_v3 = vsub.f32 1.0, %v538_v41  ;;  %658 = vmatpush.msrb.mxu3 %v641_v32  ;;  %v634_v41 = vld [vmem:[%s2217_s14] sm:$0xff] }
 0x4f8   :  { %1418 = vrcp.f32 %v536_v48  ;;  %v562_v12 = vand.u32 2147483648, %v536_v48  ;;  %v560_v16 = vand.u32 2147483647, %v536_v48  ;;  %vm556_vm9 = vweird.f32 %v536_v48 }
 0x4f9   :  { %v540_v57 = vmul.f32 %v1417_v5, %v539_v3  ;;  %659 = vmatpush.msrb.mxu3 %v640_v33 }
 0x4fa   :  { %v563_v21 = vor.u32 1.1754944e-38, %v562_v12  ;;  %vm561_vm11 = vcmp.eq.f32.partialorder %v560_v16, 8.507059e+37  ;;  %v1385_v16 = vld [vmem:[%s2218_s15] ss:$0 sm:$0xff] }
 0x4fb   :  { %v541_v58 = vadd.f32 %v1417_v5, %v540_v57  ;;  %660 = vmatpush.msrb.mxu3 %v639_v34 }
 0x4fd   :  { %v545_v0 = vsel %vm544_vm6, %v1417_v5, %v541_v58  ;;  %661 = vmatpush.msrb.mxu3 %v638_v35  ;;  %v636_v5 = vld [vmem:[%s2217_s14 + $0x10] sm:$0xff] }
 0x4fe   :  { %v550_v60 = vsel %vm547_vm7, %v549_v59, %v545_v0  ;;  %v1419_v1 = vpop.eup %1418 }
 0x4ff   :  { %v572_v6 = vmul.f32 %v570_v63, %v550_v60  ;;  %v552_v7 = vmul.f32 %v1419_v1, %v536_v48  ;;  %vm557_vm8 = vweird.f32 %v1419_v1  ;;  %662 = vmatpush.msrb.mxu3 %v637_v38 }
 0x500   :  { %vm558_vm10 = vmor %vm556_vm9, %vm557_vm8 }
 0x501   :  { %v577_v8 = vadd.f32 %v1383_v45, %v572_v6  ;;  %v553_v11 = vsub.f32 1.0, %v552_v7  ;;  %663 = vmatpush.msrb.mxu3 %v636_v5  ;;  %v1282_v5 = vld [vmem:[%s2209_s6 + $0x38] sm:$0xff] }
 0x502   :  { %805 = vmatpush.msrb.mxu2 %v1282_v5 }
 0x503   :  { %1275 = vmatmul.msk.f32.vlgmr.msrb.gmra.mxu0 %vm72_vm0, %v577_v8  ;;  %v554_v15 = vmul.f32 %v1419_v1, %v553_v11  ;;  %664 = vmatpush.msrb.mxu3 %v635_v40  ;;  %v1281_v40 = vld [vmem:[%s2209_s6 + $0x30] sm:$0xff] }
 0x504   :  { %806 = vmatpush.msrb.mxu2 %v1281_v40 }
 0x505   :  { %v555_v17 = vadd.f32 %v1419_v1, %v554_v15  ;;  %665 = vmatpush.msrb.mxu3 %v634_v41 }
 0x507   :  { %v559_v23 = vsel %vm558_vm10, %v1419_v1, %v555_v17 }
 0x508   :  { %v564_v24 = vsel %vm561_vm11, %v563_v21, %v559_v23 }
 0x509   :  { %v573_v25 = vmul.f32 %v571_v22, %v564_v24 }
 0x50b   :  { %v578_v26 = vadd.f32 %v1383_v45, %v573_v25 }
 0x50d   :  { %1276 = vmatmul.msk.f32.gmra.mxu0 %vm72_vm0, %v578_v26 }
 0x580   :  { %v610_v47 = vpop.f32.mrf.mxu0 }
 0x581   :  { %v611_v3 = vadd.f32 %v1384_v44, %v610_v47 }
 0x583   :  { %v618_v48 = vmul.f32 0.044715, %v611_v3  ;;  %v616_v60 = vmul.f32 0.5, %v611_v3 }
 0x585   :  { %v620_v49 = vmul.f32 %v618_v48, %v611_v3 }
 0x587   :  { %v622_v53 = vmul.f32 %v620_v49, %v611_v3 }
 0x589   :  { %v624_v54 = vadd.f32 %v622_v53, %v611_v3  ;;  %v1279_v3 = vld [vmem:[%s2209_s6 + $0x20] sm:$0xff] }
 0x58a   :  { %v613_v57 = vpop.f32.mrf.mxu0 }
 0x58b   :  { %v626_v46 = vmul.f32 0.7978846, %v624_v54  ;;  %v614_v58 = vadd.f32 %v1384_v44, %v613_v57  ;;  %v1280_v44 = vld [vmem:[%s2209_s6 + $0x28] sm:$0xff] }
 0x58c   :  { %807 = vmatpush.msrb.mxu2 %v1280_v44 }
 0x58d   :  { %1420 = vtanh.f32 %v626_v46  ;;  %v619_v59 = vmul.f32 0.044715, %v614_v58  ;;  %v617_v12 = vmul.f32 0.5, %v614_v58 }
 0x58e   :  { %808 = vmatpush.msrb.mxu2 %v1279_v3 }
 0x58f   :  { %v621_v63 = vmul.f32 %v619_v59, %v614_v58 }
 0x591   :  { %v623_v0 = vmul.f32 %v621_v63, %v614_v58 }
 0x593   :  { %v1421_v45 = vpop.eup %1420  ;;  %v625_v6 = vadd.f32 %v623_v0, %v614_v58 }
 0x594   :  { %v630_v1 = vadd.f32 1.0, %v1421_v45 }
 0x595   :  { %v627_v8 = vmul.f32 0.7978846, %v625_v6 }
 0x596   :  { %v632_v7 = vmul.f32 %v630_v1, %v616_v60 }
 0x597   :  { %1422 = vtanh.f32 %v627_v8 }
 0x598   :  { %666 = vmatmul.f32.vlgmr.msrb.gmra.mxu3 %v632_v7 }
 0x59d   :  { %v1423_v11 = vpop.eup %1422 }
 0x59e   :  { %v631_v14 = vadd.f32 1.0, %v1423_v11 }
 0x5a0   :  { %v633_v15 = vmul.f32 %v631_v14, %v617_v12 }
 0x5a2   :  { %669 = vmatmul.f32.gmra.mxu3 %v633_v15 }
 0x61b   :  { %v667_v17 = vpop.f32.mrf.mxu3 }
 0x61c   :  { %v673_v21 = vadd.f32 %v667_v17, %v1841_v31 }
 0x61e   :  { %v1943_v22 = vadd.f32 %v1385_v16, %v673_v21 }
 0x620   :  { %v685_v23 = vsel %vm72_vm0, %v1943_v22, 0.0  ;;  %v691_v24 = vmul.f32 %v1943_v22, %v1943_v22 }
 0x621   :  { %686 = vadd.xlane.f32.xlu2 %v685_v23 }
 0x622   :  { %v693_v25 = vsel %vm72_vm0, %v691_v24, 0.0 }
 0x623   :  { %694 = vadd.xlane.f32.xlu1 %v693_v25 }
 0x625   :  { %v670_v26 = vpop.f32.mrf.mxu3 }
 0x626   :  { %v674_v27 = vadd.f32 %v670_v26, %v1849_v39 }
 0x628   :  { %v1951_v62 = vadd.f32 %v1385_v16, %v674_v27 }
 0x62a   :  { %v688_v31 = vsel %vm72_vm0, %v1951_v62, 0.0  ;;  %v692_v29 = vmul.f32 %v1951_v62, %v1951_v62 }
 0x62b   :  { %689 = vadd.xlane.f32.xlu2 %v688_v31 }
 0x62c   :  { %v696_v30 = vsel %vm72_vm0, %v692_v29, 0.0 }
 0x62d   :  { %697 = vadd.xlane.f32.xlu1 %v696_v30 }
 0x694   :  { %v687_v32 = vpop.xlane.xlu2 %686 }
 0x695   :  { %v1958_v33 = vmul.f32 0.03125, %v687_v32 }
 0x696   :  { %v695_v35 = vpop.xlane.xlu1 %694 }
 0x697   :  { %v701_v34 = vmul.f32 %v1958_v33, %v687_v32  ;;  %v763_v32 = vsub.f32 %v1943_v22, %v1958_v33  ;;  %v1387_v33 = vld [vmem:[%s2208_s5 + $0x1] ss:$0 sm:$0xff] }
 0x699   :  { %v703_v38 = vsub.f32 %v695_v35, %v701_v34  ;;  %v1386_v35 = vld [vmem:[%s2207_s4 + $0x1] ss:$0 sm:$0xff] }
 0x69b   :  { %v705_v39 = vmul.f32 %v703_v38, %v1614_v28 }
 0x69d   :  { %v707_v41 = vmax.f32 %v705_v39, 0.0 }
 0x69e   :  { %v690_v47 = vpop.xlane.xlu2 %689 }
 0x69f   :  { %1424 = vrsqrt.f32 %v707_v41  ;;  %v1974_v48 = vmul.f32 0.03125, %v690_v47  ;;  %vm716_vm12 = vcmp.eq.f32.partialorder %v707_v41, inf  ;;  %v719_v7 = vand.u32 2147483648, %v707_v41 }
 0x6a0   :  { %v698_v53 = vpop.xlane.xlu1 %697  ;;  %vm718_vm13 = vcmp.eq.f32.partialorder %v707_v41, 0.0 }
 0x6a1   :  { %v702_v49 = vmul.f32 %v1974_v48, %v690_v47 }
 0x6a3   :  { %v704_v54 = vsub.f32 %v698_v53, %v702_v49 }
 0x6a5   :  { %v1425_v57 = vpop.eup %1424  ;;  %v706_v58 = vmul.f32 %v704_v54, %v1614_v28 }
 0x6a6   :  { %v710_v46 = vmul.f32 %v1425_v57, %v707_v41 }
 0x6a7   :  { %v708_v63 = vmax.f32 %v706_v58, 0.0  ;;  %v764_v58 = vsub.f32 %v1951_v62, %v1974_v48 }
 0x6a8   :  { %v711_v59 = vmul.f32 %v1425_v57, %v710_v46 }
 0x6a9   :  { %1426 = vrsqrt.f32 %v708_v63  ;;  %vm728_vm15 = vcmp.eq.f32.partialorder %v708_v63, inf  ;;  %v731_v25 = vand.u32 2147483648, %v708_v63  ;;  %vm730_vm1 = vcmp.eq.f32.partialorder %v708_v63, 0.0 }
 0x6aa   :  { %v712_v0 = vmul.f32 0.5, %v711_v59 }
 0x6ac   :  { %v713_v45 = vsub.f32 1.5, %v712_v0 }
 0x6ae   :  { %v714_v60 = vmul.f32 %v1425_v57, %v713_v45 }
 0x6af   :  { %v1427_v1 = vpop.eup %1426 }
 0x6b0   :  { %v715_v6 = vmul.f32 %v714_v60, %v707_v41  ;;  %v722_v8 = vmul.f32 %v1427_v1, %v708_v63  ;;  %v769_v60 = vmul.f32 %v1386_v35, %v764_v58 }
 0x6b2   :  { %v717_v11 = vsel %vm716_vm12, %v707_v41, %v715_v6  ;;  %v723_v12 = vmul.f32 %v1427_v1, %v722_v8  ;;  %v768_v41 = vmul.f32 %v1386_v35, %v763_v32 }
 0x6b3   :  { %v720_v14 = vsel %vm718_vm13, %v719_v7, %v717_v11  ;;  %v1388_v11 = vld [vmem:[%s2210_s7 + $0x1] ss:$0 sm:$0xff] }
 0x6b4   :  { %v733_v15 = vadd.f32 1e-06, %v720_v14  ;;  %v724_v16 = vmul.f32 0.5, %v723_v12 }
 0x6b6   :  { %1428 = vrcp.f32 %v733_v15  ;;  %v725_v17 = vsub.f32 1.5, %v724_v16  ;;  %v746_v34 = vand.u32 2147483648, %v733_v15  ;;  %v744_v39 = vand.u32 2147483647, %v733_v15 }
 0x6b7   :  { %vm740_vm3 = vweird.f32 %v733_v15 }
 0x6b8   :  { %v726_v21 = vmul.f32 %v1427_v1, %v725_v17  ;;  %v747_v40 = vor.u32 1.1754944e-38, %v746_v34  ;;  %vm745_vm5 = vcmp.eq.f32.partialorder %v744_v39, 8.507059e+37 }
 0x6ba   :  { %v727_v23 = vmul.f32 %v726_v21, %v708_v63 }
 0x6bc   :  { %v1429_v24 = vpop.eup %1428  ;;  %v729_v27 = vsel %vm728_vm15, %v708_v63, %v727_v23 }
 0x6bd   :  { %v736_v26 = vmul.f32 %v1429_v24, %v733_v15  ;;  %v732_v31 = vsel %vm730_vm1, %v731_v25, %v729_v27  ;;  %vm741_vm2 = vweird.f32 %v1429_v24 }
 0x6be   :  { %v734_v30 = vadd.f32 1e-06, %v732_v31  ;;  %vm742_vm4 = vmor %vm740_vm3, %vm741_vm2 }
 0x6bf   :  { %v737_v29 = vsub.f32 1.0, %v736_v26 }
 0x6c0   :  { %1430 = vrcp.f32 %v734_v30  ;;  %v760_v46 = vand.u32 2147483648, %v734_v30  ;;  %v758_v63 = vand.u32 2147483647, %v734_v30  ;;  %vm754_vm7 = vweird.f32 %v734_v30 }
 0x6c1   :  { %v738_v38 = vmul.f32 %v1429_v24, %v737_v29 }
 0x6c2   :  { %v761_v45 = vor.u32 1.1754944e-38, %v760_v46  ;;  %vm759_vm9 = vcmp.eq.f32.partialorder %v758_v63, 8.507059e+37 }
 0x6c3   :  { %v739_v5 = vadd.f32 %v1429_v24, %v738_v38 }
 0x6c5   :  { %v743_v44 = vsel %vm742_vm4, %v1429_v24, %v739_v5 }
 0x6c6   :  { %v748_v47 = vsel %vm745_vm5, %v747_v40, %v743_v44  ;;  %v1431_v3 = vpop.eup %1430 }
 0x6c7   :  { %v770_v49 = vmul.f32 %v768_v41, %v748_v47  ;;  %v750_v53 = vmul.f32 %v1431_v3, %v734_v30  ;;  %vm755_vm6 = vweird.f32 %v1431_v3 }
 0x6c8   :  { %vm756_vm8 = vmor %vm754_vm7, %vm755_vm6 }
 0x6c9   :  { %v775_v54 = vadd.f32 %v1387_v33, %v770_v49  ;;  %v751_v57 = vsub.f32 1.0, %v750_v53 }
 0x6cb   :  { %1284 = vmatmul.msk.f32.vlgmr.msrb.gmra.mxu2 %vm72_vm0, %v775_v54  ;;  %v752_v59 = vmul.f32 %v1431_v3, %v751_v57 }
 0x6cd   :  { %v753_v0 = vadd.f32 %v1431_v3, %v752_v59 }
 0x6cf   :  { %v757_v1 = vsel %vm756_vm8, %v1431_v3, %v753_v0 }
 0x6d0   :  { %v762_v6 = vsel %vm759_vm9, %v761_v45, %v757_v1 }
 0x6d1   :  { %v771_v7 = vmul.f32 %v769_v60, %v762_v6 }
 0x6d3   :  { %v776_v8 = vadd.f32 %v1387_v33, %v771_v7 }
 0x6d5   :  { %1285 = vmatmul.msk.f32.gmra.mxu2 %vm72_vm0, %v776_v8 }
 0x74e   :  { %v810_v48 = vpop.f32.mrf.mxu2 }
 0x74f   :  { %v1993_v12 = vadd.f32 %v1388_v11, %v810_v48 }
 0x751   :  { %v822_v14 = vmul.f32 %v1993_v12, %v1682_v37  ;;  %v820_v24 = vmul.f32 %v1993_v12, %v1709_v51  ;;  %v816_v26 = vmul.f32 %v1993_v12, %v1711_v52  ;;  %v828_v31 = vmul.f32 %v1993_v12, %v1770_v13 }
 0x752   :  { %v818_v29 = vmul.f32 %v1993_v12, %v1706_v50  ;;  %v824_v13 = vmul.f32 %v1993_v12, %v1778_v19 }
 0x753   :  { %892 = vrot.lane.b32.xlu2 %v822_v14, %s1480_s3 }
 0x758   :  { %v813_v15 = vpop.f32.mrf.mxu2 }
 0x759   :  { %v1998_v16 = vadd.f32 %v1388_v11, %v813_v15 }
 0x75b   :  { %v823_v17 = vmul.f32 %v1998_v16, %v1680_v36  ;;  %v821_v21 = vmul.f32 %v1998_v16, %v1694_v43  ;;  %v819_v23 = vmul.f32 %v1998_v16, %v1691_v42  ;;  %v817_v25 = vmul.f32 %v1998_v16, %v1722_v56 }
 0x75c   :  { %v829_v27 = vmul.f32 %v1998_v16, %v1749_v61  ;;  %v831_v32 = vmul.f32 %v1998_v16, %v1751_v4  ;;  %v825_v34 = vmul.f32 %v1998_v16, %v1782_v20  ;;  %v830_v61 = vmul.f32 %v1993_v12, %v1746_v2 }
 0x75d   :  { %894 = vrot.lane.b32.xlu0 %v823_v17, %s1480_s3  ;;  %890 = vrot.lane.b32.xlu1 %v821_v21, %s1480_s3  ;;  %v827_v39 = vmul.f32 %v1998_v16, %v1758_v9  ;;  %v826_v4 = vmul.f32 %v1993_v12, %v1762_v10  ;;  %v1300_v21 = vld [vmem:[%s2211_s8 + $0x30] sm:$0xff] }
 0x75e   :  { %886 = vrot.lane.b32.xlu2 %v819_v23, %s1480_s3  ;;  %v1363_v30 = vpack.i.bf16 %v828_v31, %v829_v27  ;;  %v1358_v35 = vpack.i.bf16 %v830_v61, %v831_v32  ;;  %v1373_v38 = vpack.i.bf16 %v824_v13, %v825_v34  ;;  %v1299_v23 = vld [vmem:[%s2211_s8 + $0x28] sm:$0xff]  ;;  %v1389_v61 = vld [vmem:[%s2212_s9 + $0x1] ss:$0 sm:$0xff] }
 0x75f   :  { %v1368_v5 = vpack.i.bf16 %v826_v4, %v827_v39 }
 0x765   :  { %888 = vrot.lane.b32.xlu0 %v820_v24, %s1480_s3  ;;  %882 = vrot.lane.b32.xlu1 %v817_v25, %s1480_s3  ;;  %v1298_v24 = vld [vmem:[%s2211_s8 + $0x20] sm:$0xff] }
 0x766   :  { %880 = vrot.lane.b32.xlu2 %v816_v26, %s1480_s3 }
 0x76d   :  { %884 = vrot.lane.b32.xlu0 %v818_v29, %s1480_s3  ;;  %1364 = vrot.lane.b32.xlu1 %v1363_v30, %s1481_s24 }
 0x775   :  { %1359 = vrot.lane.b32.xlu0 %v1358_v35, %s1481_s24  ;;  %1374 = vrot.lane.b32.xlu1 %v1373_v38, %s1481_s24 }
 0x77d   :  { %1369 = vrot.lane.b32.xlu0 %v1368_v5, %s1481_s24 }
 0x7ad   :  { %v893_v19 = vpop.permute.xlu2 %892 }
 0x7b8   :  { %v887_v9 = vpop.permute.xlu2 %886 }
 0x7c0   :  { %v881_v54 = vpop.permute.xlu2 %880 }
 0x7cf   :  { %v895_v20 = vpop.permute.xlu0 %894  ;;  %v891_v2 = vpop.permute.xlu1 %890 }
 0x7d0   :  { %1286 = vmatpush.xpose.msk.msra.mxu0 %vm72_vm0, %v895_v20 }
 0x7d4   :  { %1287 = vmatpush.xpose.msk.msra.mxu0 %vm72_vm0, %v893_v19 }
 0x7d7   :  { %v889_v40 = vpop.permute.xlu0 %888  ;;  %v883_v41 = vpop.permute.xlu1 %882 }
 0x7d8   :  { %1288 = vmatpush.xpose.msk.msra.mxu0 %vm72_vm0, %v891_v2 }
 0x7dc   :  { %1289 = vmatpush.xpose.msk.msra.mxu0 %vm72_vm0, %v889_v40 }
 0x7df   :  { %v885_v44 = vpop.permute.xlu0 %884  ;;  %v1365_v10 = vpop.permute.xlu1 %1364 }
 0x7e0   :  { %1290 = vmatpush.xpose.msk.msra.mxu0 %vm72_vm0, %v887_v9  ;;  %v1366_v49 = vunpack.i.l.bf16 %v1365_v10  ;;  %v1367_v57 = vunpack.i.h.bf16 %v1365_v10 }
 0x7e2   :  { %v869_v58 = vsel %vm72_vm0, %v1366_v49, %v1694_v43  ;;  %v868_v45 = vsel %vm72_vm0, %v1367_v57, %v1709_v51  ;;  %v1308_v49 = vld [vmem:[%s2215_s12 + $0x28] sm:$0xff] }
 0x7e4   :  { %1291 = vmatpush.xpose.msk.msra.mxu0 %vm72_vm0, %v885_v44 }
 0x7e7   :  { %v1360_v33 = vpop.permute.xlu0 %1359  ;;  %v1375_v59 = vpop.permute.xlu1 %1374 }
 0x7e8   :  { %v1362_v47 = vunpack.i.h.bf16 %v1360_v33  ;;  %v1361_v3 = vunpack.i.l.bf16 %v1360_v33  ;;  %1292 = vmatpush.xpose.msk.msra.mxu0 %vm72_vm0, %v883_v41  ;;  %v1376_v60 = vunpack.i.l.bf16 %v1375_v59  ;;  %v1377_v1 = vunpack.i.h.bf16 %v1375_v59 }
 0x7ea   :  { %v871_v53 = vsel %vm72_vm0, %v1361_v3, %v1680_v36  ;;  %v870_v46 = vsel %vm72_vm0, %v1362_v47, %v1682_v37  ;;  %v865_v6 = vsel %vm72_vm0, %v1376_v60, %v1722_v56  ;;  %v864_v51 = vsel %vm72_vm0, %v1377_v1, %v1711_v52  ;;  %v1309_v47 = vld [vmem:[%s2215_s12 + $0x30] sm:$0xff] }
 0x7eb   :  { %967 = vmatpush.msra.mxu2 %v871_v53 }
 0x7ec   :  { %1293 = vmatpush.xpose.msk.msra.mxu0 %vm72_vm0, %v881_v54  ;;  %v1307_v54 = vld [vmem:[%s2215_s12 + $0x20] sm:$0xff] }
 0x7ed   :  { %968 = vmatpush.msra.mxu2 %v870_v46 }
 0x7ef   :  { %v1370_v63 = vpop.permute.xlu0 %1369  ;;  %1294 = vmatmul.msk.f32.vlgmr.msra.gmra.mxu0 %vm72_vm0, %v1993_v12  ;;  %969 = vmatpush.msra.mxu2 %v869_v58 }
 0x7f0   :  { %v1372_v0 = vunpack.i.h.bf16 %v1370_v63  ;;  %v1371_v36 = vunpack.i.l.bf16 %v1370_v63 }
 0x7f1   :  { %970 = vmatpush.msra.mxu2 %v868_v45 }
 0x7f2   :  { %v867_v37 = vsel %vm72_vm0, %v1371_v36, %v1691_v42  ;;  %v866_v43 = vsel %vm72_vm0, %v1372_v0, %v1706_v50 }
 0x7f3   :  { %971 = vmatpush.msra.mxu2 %v867_v37 }
 0x7f5   :  { %972 = vmatpush.msra.mxu2 %v866_v43 }
 0x7f7   :  { %1295 = vmatmul.msk.f32.gmra.mxu0 %vm72_vm0, %v1998_v16  ;;  %973 = vmatpush.msra.mxu2 %v865_v6 }
 0x7f9   :  { %974 = vmatpush.msra.mxu2 %v864_v51 }
 0x86c   :  { %v935_v7 = vpop.f32.mrf.mxu0 }
 0x86d   :  { %v936_v42 = vadd.f32 %v935_v7, %v1798_v18 }
 0x86f   :  { %v941_v8 = vsel %vm390_vm14, %v936_v42, -inf }
 0x870   :  { %942 = vmax.xlane.f32.xlu2 %v941_v8 }
 0x874   :  { %v938_v11 = vpop.f32.mrf.mxu0 }
 0x875   :  { %v939_v50 = vadd.f32 %v938_v11, %v1813_v55  ;;  %v1301_v55 = vld [vmem:[%s2211_s8 + $0x38] sm:$0xff] }
 0x876   :  { %1017 = vmatpush.msrb.mxu2 %v1301_v55 }
 0x877   :  { %v944_v48 = vsel %vm390_vm14, %v939_v50, -inf }
 0x878   :  { %945 = vmax.xlane.f32.xlu0 %v944_v48  ;;  %1018 = vmatpush.msrb.mxu2 %v1300_v21 }
 0x87a   :  { %1019 = vmatpush.msrb.mxu2 %v1299_v23 }
 0x87c   :  { %1020 = vmatpush.msrb.mxu2 %v1298_v24 }
 0x8e3   :  { %v943_v56 = vpop.xlane.xlu2 %942 }
 0x8e4   :  { %v947_v12 = vsub.f32 %v936_v42, %v943_v56 }
 0x8e6   :  { %v949_v14 = vmul.f32 1.442695, %v947_v12 }
 0x8e8   :  { %1432 = vpow2.f32 %v949_v14 }
 0x8eb   :  { %v946_v15 = vpop.xlane.xlu0 %945 }
 0x8ec   :  { %v948_v16 = vsub.f32 %v939_v50, %v946_v15  ;;  %v1328_v15 = vld [vmem:[%s2217_s14 + $0xf0] sm:$0xff] }
 0x8ee   :  { %v1433_v52 = vpop.eup %1432  ;;  %v951_v17 = vmul.f32 1.442695, %v948_v16 }
 0x8ef   :  { %1296 = vmatmul.msk.f32.vlgmr.msra.gmra.mxu2 %vm390_vm14, %v1433_v52  ;;  %v1327_v52 = vld [vmem:[%s2217_s14 + $0xe8] sm:$0xff] }
 0x8f0   :  { %1434 = vpow2.f32 %v951_v17 }
 0x8f6   :  { %v1435_v18 = vpop.eup %1434 }
 0x8f7   :  { %1297 = vmatmul.msk.f32.gmra.mxu2 %vm390_vm14, %v1435_v18  ;;  %v1326_v18 = vld [vmem:[%s2217_s14 + $0xe0] sm:$0xff] }
 0x972   :  { %v976_v25 = vpop.f32.mrf.mxu2 }
 0x973   :  { %1436 = vrcp.f32 %v976_v25 }
 0x979   :  { %v1437_v26 = vpop.eup %1436 }
 0x97a   :  { %986 = vrot.lane.b32.xlu1 %v1437_v26, %s1480_s3  ;;  %v979_v27 = vpop.f32.mrf.mxu2 }
 0x97b   :  { %1438 = vrcp.f32 %v979_v27 }
 0x981   :  { %v1439_v31 = vpop.eup %1438 }
 0x982   :  { %988 = vrot.lane.b32.xlu1 %v1439_v31, %s1480_s3 }
 0x9ec   :  { %v987_v29 = vpop.permute.xlu1 %986 }
 0x9ed   :  { %v992_v30 = vmul.f32 %v987_v29, %v976_v25 }
 0x9ef   :  { %1302 = vmatmul.msk.f32.vlgmr.msrb.gmra.mxu2 %vm72_vm0, %v992_v30 }
 0x9f4   :  { %v989_v32 = vpop.permute.xlu1 %988 }
 0x9f5   :  { %v993_v34 = vmul.f32 %v989_v32, %v979_v27  ;;  %v1390_v32 = vld [vmem:[%s2213_s10 + $0x1] ss:$0 sm:$0xff]  ;;  %s1245_s10 = sshll.u32 %s1482_s25, 4  ;;  %s1246_s10 = int_to_ptr.vmem [resolvable:$true] %s1245_s10 }
 0x9f7   :  { %1303 = vmatmul.msk.f32.gmra.mxu2 %vm72_vm0, %v993_v34 }
 0xa72   :  { %v1022_v13 = vpop.f32.mrf.mxu2 }
 0xa73   :  { %v1028_v35 = vadd.f32 %v1022_v13, %v1943_v22 }
 0xa75   :  { %v2095_v38 = vadd.f32 %v1389_v61, %v1028_v35 }
 0xa77   :  { %v1041_v39 = vsel %vm72_vm0, %v2095_v38, 0.0  ;;  %v1047_v4 = vmul.f32 %v2095_v38, %v2095_v38 }
 0xa78   :  { %1042 = vadd.xlane.f32.xlu1 %v1041_v39 }
 0xa79   :  { %v1049_v5 = vsel %vm72_vm0, %v1047_v4, 0.0 }
 0xa7a   :  { %1050 = vadd.xlane.f32.xlu2 %v1049_v5  ;;  %v1025_v20 = vpop.f32.mrf.mxu2  ;;  %v1391_v5 = vld [vmem:[%s2214_s11 + $0x1] ss:$0 sm:$0xff] }
 0xa7b   :  { %v1029_v2 = vadd.f32 %v1025_v20, %v1951_v62  ;;  %v1310_v62 = vld [vmem:[%s2215_s12 + $0x38] sm:$0xff] }
 0xa7c   :  { %1161 = vmatpush.msra.mxu3 %v1310_v62 }
 0xa7d   :  { %v2103_v19 = vadd.f32 %v1389_v61, %v1029_v2 }
 0xa7e   :  { %1162 = vmatpush.msra.mxu3 %v1309_v47 }
 0xa7f   :  { %v1048_v22 = vmul.f32 %v2103_v19, %v2103_v19  ;;  %v1044_v41 = vsel %vm72_vm0, %v2103_v19, 0.0 }
 0xa80   :  { %1163 = vmatpush.msra.mxu3 %v1308_v49 }
 0xa81   :  { %v1052_v40 = vsel %vm72_vm0, %v1048_v22, 0.0 }
 0xa82   :  { %1053 = vadd.xlane.f32.xlu0 %v1052_v40  ;;  %1045 = vadd.xlane.f32.xlu2 %v1044_v41 }
 0xa83   :  { %1164 = vmatpush.msra.mxu3 %v1307_v54 }
 0xaeb   :  { %v1043_v9 = vpop.xlane.xlu1 %1042 }
 0xaec   :  { %v2110_v44 = vmul.f32 0.03125, %v1043_v9 }
 0xaed   :  { %v1051_v10 = vpop.xlane.xlu2 %1050 }
 0xaee   :  { %v1057_v33 = vmul.f32 %v2110_v44, %v1043_v9  ;;  %v1119_v29 = vsub.f32 %v2095_v38, %v2110_v44 }
 0xaf0   :  { %v1059_v3 = vsub.f32 %v1051_v10, %v1057_v33  ;;  %v1124_v39 = vmul.f32 %v1390_v32, %v1119_v29  ;;  %v1393_v29 = vld [vmem:[%s2218_s15 + $0x1] ss:$0 sm:$0xff]  ;;  %s1483_s15 = smov 128  }
 0xaf2   :  { %v1061_v53 = vmul.f32 %v1059_v3, %v1614_v28 }
 0xaf4   :  { %v1063_v57 = vmax.f32 %v1061_v53, 0.0 }
 0xaf5   :  { %v1046_v46 = vpop.xlane.xlu2 %1045  ;;  %v1054_v63 = vpop.xlane.xlu0 %1053 }
 0xaf6   :  { %1440 = vrsqrt.f32 %v1063_v57  ;;  %v2126_v58 = vmul.f32 0.03125, %v1046_v46  ;;  %vm1072_vm14 = vcmp.eq.f32.partialorder %v1063_v57, inf  ;;  %v1075_v8 = vand.u32 2147483648, %v1063_v57 }
 0xaf7   :  { %vm1074_vm10 = vcmp.eq.f32.partialorder %v1063_v57, 0.0 }
 0xaf8   :  { %v1058_v59 = vmul.f32 %v2126_v58, %v1046_v46  ;;  %v1120_v10 = vsub.f32 %v2103_v19, %v2126_v58  ;;  %v1324_v58 = vld [vmem:[%s2217_s14 + $0xd0] sm:$0xff] }
 0xafa   :  { %v1060_v0 = vsub.f32 %v1054_v63, %v1058_v59  ;;  %v1125_v49 = vmul.f32 %v1390_v32, %v1120_v10  ;;  %v1325_v59 = vld [vmem:[%s2217_s14 + $0xd8] sm:$0xff]  ;;  %v1323_v63 = vld [vmem:[%s2217_s14 + $0xc8] sm:$0xff] }
 0xafc   :  { %v1441_v36 = vpop.eup %1440  ;;  %v1062_v60 = vmul.f32 %v1060_v0, %v1614_v28  ;;  %v1329_v28 = vld [vmem:[%s2217_s14 + $0xf8] sm:$0xff]  ;;  %v1322_v0 = vld [vmem:[%s2217_s14 + $0xc0] sm:$0xff] }
 0xafd   :  { %v1066_v45 = vmul.f32 %v1441_v36, %v1063_v57  ;;  %1207 = vmatpush.msrb.mxu1 %v1329_v28 }
 0xafe   :  { %v1064_v1 = vmax.f32 %v1062_v60, 0.0  ;;  %v1319_v60 = vld [vmem:[%s2217_s14 + $0xa8] sm:$0xff] }
 0xaff   :  { %v1067_v37 = vmul.f32 %v1441_v36, %v1066_v45  ;;  %1208 = vmatpush.msrb.mxu1 %v1328_v15  ;;  %v1320_v45 = vld [vmem:[%s2217_s14 + $0xb0] sm:$0xff] }
 0xb00   :  { %1442 = vrsqrt.f32 %v1064_v1  ;;  %vm1084_vm11 = vcmp.eq.f32.partialorder %v1064_v1, inf  ;;  %v1087_v23 = vand.u32 2147483648, %v1064_v1  ;;  %vm1086_vm12 = vcmp.eq.f32.partialorder %v1064_v1, 0.0 }
 0xb01   :  { %v1068_v43 = vmul.f32 0.5, %v1067_v37  ;;  %1209 = vmatpush.msrb.mxu1 %v1327_v52  ;;  %v1318_v37 = vld [vmem:[%s2217_s14 + $0xa0] sm:$0xff] }
 0xb03   :  { %v1069_v6 = vsub.f32 1.5, %v1068_v43  ;;  %1210 = vmatpush.msrb.mxu1 %v1326_v18  ;;  %v1316_v43 = vld [vmem:[%s2217_s14 + $0x90] sm:$0xff] }
 0xb05   :  { %v1070_v51 = vmul.f32 %v1441_v36, %v1069_v6  ;;  %1211 = vmatpush.msrb.mxu1 %v1325_v59  ;;  %v1321_v36 = vld [vmem:[%s2217_s14 + $0xb8] sm:$0xff]  ;;  %v1315_v6 = vld [vmem:[%s2217_s14 + $0x88] sm:$0xff] }
 0xb06   :  { %v1443_v7 = vpop.eup %1442 }
 0xb07   :  { %v1071_v42 = vmul.f32 %v1070_v51, %v1063_v57  ;;  %v1078_v11 = vmul.f32 %v1443_v7, %v1064_v1  ;;  %1212 = vmatpush.msrb.mxu1 %v1324_v58  ;;  %v1314_v51 = vld [vmem:[%s2217_s14 + $0x80] sm:$0xff] }
 0xb09   :  { %v1073_v50 = vsel %vm1072_vm14, %v1063_v57, %v1071_v42  ;;  %v1079_v56 = vmul.f32 %v1443_v7, %v1078_v11  ;;  %1213 = vmatpush.msrb.mxu1 %v1323_v63 }
 0xb0a   :  { %v1076_v48 = vsel %vm1074_vm10, %v1075_v8, %v1073_v50 }
 0xb0b   :  { %v1089_v12 = vadd.f32 1e-06, %v1076_v48  ;;  %v1080_v14 = vmul.f32 0.5, %v1079_v56  ;;  %1214 = vmatpush.msrb.mxu1 %v1322_v0 }
 0xb0d   :  { %1444 = vrcp.f32 %v1089_v12  ;;  %v1081_v16 = vsub.f32 1.5, %v1080_v14  ;;  %v1102_v30 = vand.u32 2147483648, %v1089_v12  ;;  %v1100_v61 = vand.u32 2147483647, %v1089_v12  ;;  %1215 = vmatpush.msrb.mxu1 %v1321_v36 }
 0xb0e   :  { %vm1096_vm15 = vweird.f32 %v1089_v12 }
 0xb0f   :  { %v1082_v17 = vmul.f32 %v1443_v7, %v1081_v16  ;;  %v1103_v35 = vor.u32 1.1754944e-38, %v1102_v30  ;;  %vm1101_vm2 = vcmp.eq.f32.partialorder %v1100_v61, 8.507059e+37  ;;  %1216 = vmatpush.msrb.mxu1 %v1320_v45  ;;  %v1392_v7 = vld [vmem:[%s2216_s13 + $0x1] ss:$0 sm:$0xff] }
 0xb11   :  { %v1083_v55 = vmul.f32 %v1082_v17, %v1064_v1  ;;  %1217 = vmatpush.msrb.mxu1 %v1319_v60 }
 0xb13   :  { %v1445_v21 = vpop.eup %1444  ;;  %v1085_v25 = vsel %vm1084_vm11, %v1064_v1, %v1083_v55  ;;  %v1317_v1 = vld [vmem:[%s2217_s14 + $0x98] sm:$0xff]  ;;  %1218 = vmatpush.msrb.mxu1 %v1318_v37 }
 0xb14   :  { %v1092_v24 = vmul.f32 %v1445_v21, %v1089_v12  ;;  %v1088_v26 = vsel %vm1086_vm12, %v1087_v23, %v1085_v25  ;;  %vm1097_vm13 = vweird.f32 %v1445_v21 }
 0xb15   :  { %v1090_v31 = vadd.f32 1e-06, %v1088_v26  ;;  %vm1098_vm1 = vmor %vm1096_vm15, %vm1097_vm13  ;;  %1219 = vmatpush.msrb.mxu1 %v1317_v1 }
 0xb16   :  { %v1093_v27 = vsub.f32 1.0, %v1092_v24 }
 0xb17   :  { %1446 = vrcp.f32 %v1090_v31  ;;  %v1116_v44 = vand.u32 2147483648, %v1090_v31  ;;  %v1114_v62 = vand.u32 2147483647, %v1090_v31  ;;  %vm1110_vm4 = vweird.f32 %v1090_v31  ;;  %1220 = vmatpush.msrb.mxu1 %v1316_v43 }
 0xb18   :  { %v1094_v34 = vmul.f32 %v1445_v21, %v1093_v27 }
 0xb19   :  { %v1117_v3 = vor.u32 1.1754944e-38, %v1116_v44  ;;  %vm1115_vm6 = vcmp.eq.f32.partialorder %v1114_v62, 8.507059e+37  ;;  %1221 = vmatpush.msrb.mxu1 %v1315_v6 }
 0xb1a   :  { %v1095_v13 = vadd.f32 %v1445_v21, %v1094_v34 }
 0xb1b   :  { %1222 = vmatpush.msrb.mxu1 %v1314_v51 }
 0xb1c   :  { %v1099_v4 = vsel %vm1098_vm1, %v1445_v21, %v1095_v13 }
 0xb1d   :  { %v1104_v20 = vsel %vm1101_vm2, %v1103_v35, %v1099_v4  ;;  %v1447_v2 = vpop.eup %1446 }
 0xb1e   :  { %v1126_v22 = vmul.f32 %v1124_v39, %v1104_v20  ;;  %v1106_v40 = vmul.f32 %v1447_v2, %v1090_v31  ;;  %vm1111_vm3 = vweird.f32 %v1447_v2 }
 0xb1f   :  { %vm1112_vm5 = vmor %vm1110_vm4, %vm1111_vm3 }
 0xb20   :  { %v1131_v41 = vadd.f32 %v1391_v5, %v1126_v22  ;;  %v1107_v9 = vsub.f32 1.0, %v1106_v40 }
 0xb22   :  { %1312 = vmatmul.msk.f32.vlgmr.msra.gmra.mxu3 %vm72_vm0, %v1131_v41  ;;  %v1108_v33 = vmul.f32 %v1447_v2, %v1107_v9 }
 0xb24   :  { %v1109_v47 = vadd.f32 %v1447_v2, %v1108_v33 }
 0xb26   :  { %v1113_v53 = vsel %vm1112_vm5, %v1447_v2, %v1109_v47 }
 0xb27   :  { %v1118_v54 = vsel %vm1115_vm6, %v1117_v3, %v1113_v53 }
 0xb28   :  { %v1127_v57 = vmul.f32 %v1125_v49, %v1118_v54 }
 0xb2a   :  { %v1132_v46 = vadd.f32 %v1391_v5, %v1127_v57 }
 0xb2c   :  { %1313 = vmatmul.msk.f32.gmra.mxu3 %vm72_vm0, %v1132_v46 }
 0xba5   :  { %v1166_v42 = vpop.f32.mrf.mxu3 }
 0xba6   :  { %v1167_v8 = vadd.f32 %v1392_v7, %v1166_v42 }
 0xba8   :  { %v1174_v11 = vmul.f32 0.044715, %v1167_v8  ;;  %v1172_v18 = vmul.f32 0.5, %v1167_v8 }
 0xbaa   :  { %v1176_v50 = vmul.f32 %v1174_v11, %v1167_v8 }
 0xbac   :  { %v1178_v48 = vmul.f32 %v1176_v50, %v1167_v8 }
 0xbae   :  { %v1180_v56 = vadd.f32 %v1178_v48, %v1167_v8 }
 0xbaf   :  { %v1169_v12 = vpop.f32.mrf.mxu3 }
 0xbb0   :  { %v1182_v14 = vmul.f32 0.7978846, %v1180_v56  ;;  %v1170_v28 = vadd.f32 %v1392_v7, %v1169_v12 }
 0xbb2   :  { %1448 = vtanh.f32 %v1182_v14  ;;  %v1175_v15 = vmul.f32 0.044715, %v1170_v28  ;;  %v1173_v26 = vmul.f32 0.5, %v1170_v28 }
 0xbb4   :  { %v1177_v16 = vmul.f32 %v1175_v15, %v1170_v28 }
 0xbb6   :  { %v1179_v52 = vmul.f32 %v1177_v16, %v1170_v28 }
 0xbb8   :  { %v1449_v17 = vpop.eup %1448  ;;  %v1181_v21 = vadd.f32 %v1179_v52, %v1170_v28 }
 0xbb9   :  { %v1186_v55 = vadd.f32 1.0, %v1449_v17 }
 0xbba   :  { %v1183_v24 = vmul.f32 0.7978846, %v1181_v21 }
 0xbbb   :  { %v1188_v23 = vmul.f32 %v1186_v55, %v1172_v18 }
 0xbbc   :  { %1450 = vtanh.f32 %v1183_v24 }
 0xbbd   :  { %1223 = vmatmul.f32.vlgmr.msrb.gmra.mxu1 %v1188_v23 }
 0xbc2   :  { %v1451_v25 = vpop.eup %1450 }
 0xbc3   :  { %v1187_v27 = vadd.f32 1.0, %v1451_v25 }
 0xbc5   :  { %v1189_v31 = vmul.f32 %v1187_v27, %v1173_v26 }
 0xbc7   :  { %1226 = vmatmul.f32.gmra.mxu1 %v1189_v31 }
 0xc3a   :  { %v1224_v30 = vpop.f32.mrf.mxu1 }
 0xc3b   :  { %v1230_v32 = vadd.f32 %v1224_v30, %v2095_v38 }
 0xc3d   :  { %v1237_v34 = vadd.f32 %v1393_v29, %v1230_v32 }
 0xc3f   :  { %1239 = vst.msk [vmem:[#allocation2] sm:$0xff] %vm72_vm0, %v1237_v34 }
 0xc44   :  { %v1227_v61 = vpop.f32.mrf.mxu1 }
 0xc45   :  { %v1231_v13 = vadd.f32 %v1227_v61, %v2103_v19 }
 0xc47   :  { %v1238_v35 = vadd.f32 %v1393_v29, %v1231_v13 }
 0xc49   :  { %1240 = vst.msk [vmem:[#allocation2 + $0x8] sm:$0xff] %vm72_vm0, %v1238_v35 }
 0xc4a   :  { %1253 = dma.vmem_to_hbm [thread:$0]  %s1246_s10, 256, %s1248_s27, [#allocation3], %s1483_s15, %s1483_s15, %s1484_s28  }
 0xc4b   :  { %1476 = dma.done.wait [#allocation3], 256  }
 0xc4c   :  { %1477 = vsyncadd [#allocation3], 4294967040 }
 0xc4d   :  { %1258 = vsyncpa [#allocation3], 1 }

</bundles_post_ra>
